<compile_context>
chip_gen: v5e
topology: v5e:2x2
jax: 0.10.0
libtpu: 0.0.40
codegen_flags: <defaults>
</compile_context>

<pallas_src>
import functools

import jax
import jax.numpy as jnp
from jax.experimental import pallas as pl
from jax.experimental.pallas import tpu as pltpu


def _cca_kernel(q_ref, k_ref, v_ref, x_ref, diag_ref, gamma_ref, o_ref, *,
                tile_w):
    """One (image b, column-block j) step of criss-cross attention.

    q_ref    : (1, H, tile_w, C)  Q column tile (pipelined over j)
    k_ref    : (1, H, W, C)       full K for this image (resident across j)
    v_ref    : (1, H, W, C)       full V for this image (resident across j)
    x_ref    : (1, H, tile_w, C)  residual column tile (pipelined over j)
    diag_ref : (H, H)             additive mask: -1e30 on diagonal, 0 elsewhere
    gamma_ref: (1, 1) SMEM        residual scale
    o_ref    : (1, H, tile_w, C)
    """
    _, H, W, C = k_ref.shape
    j = pl.program_id(1)
    col0 = pl.multiple_of(j * tile_w, tile_w)

    q = q_ref[0]                                         # (H, Tj, C)
    k = k_ref[0]                                         # (H, W,  C)
    v = v_ref[0]                                         # (H, W,  C)
    k_col = k_ref[0, :, pl.ds(col0, tile_w), :]          # (H, Tj, C)
    v_col = v_ref[0, :, pl.ds(col0, tile_w), :]          # (H, Tj, C)

    # Column-frame (W-major) tiles via small per-step transposes (XLU slot).
    q_t = jnp.transpose(q, (1, 0, 2))                    # (Tj, H, C)
    k_t = jnp.transpose(k_col, (1, 0, 2))                # (Tj, H, C)
    v_t = jnp.transpose(v_col, (1, 0, 2))                # (Tj, H, C)

    # Criss-cross energies (f32 accumulation on the MXU).
    # e_h[j, i, h] = <q[i, j, :], k[h, j, :]>
    # e_w[i, j, w] = <q[i, j, :], k[i, w, :]>
    e_h = jnp.einsum('jic,jhc->jih', q_t, k_t,
                     preferred_element_type=jnp.float32)          # (Tj, H, H)
    # Additive diagonal mask must stay f32 (a bf16 accumulation would overflow).
    e_h = e_h + diag_ref[...]
    e_w = jnp.einsum('ijc,iwc->ijw', q, k,
                     preferred_element_type=jnp.float32)          # (H, Tj, W)

    # Joint softmax over the concatenated [H-row | W-row] energies per pixel.
    # Each (H, Tj) / (Tj, H) quantity is transposed exactly once (no repeats).
    m_h = jnp.max(e_h, axis=-1)                                   # (Tj, H)
    m_h_row = jnp.transpose(m_h, (1, 0))                          # (H, Tj)
    m_row = jnp.maximum(m_h_row, jnp.max(e_w, axis=-1))           # (H, Tj)
    m_col = jnp.transpose(m_row, (1, 0))                          # (Tj, H)

    p_h = jnp.exp(e_h - m_col[:, :, None])                        # (Tj, H, H)
    p_w = jnp.exp(e_w - m_row[:, :, None])                        # (H, Tj, W)

    denom = (jnp.transpose(jnp.sum(p_h, axis=-1), (1, 0))
             + jnp.sum(p_w, axis=-1))                             # (H, Tj)
    # Fold gamma into the reciprocal: one (H, Tj, C) scale pass, EUP recip.
    ginv = gamma_ref[0, 0] * pl.reciprocal(denom, approx=True)    # (H, Tj)

    # Attention-weighted values.
    out_h = jnp.einsum('jih,jhc->jic', p_h.astype(v_t.dtype), v_t,
                       preferred_element_type=jnp.float32)        # (Tj, H, C)
    out_h = jnp.transpose(out_h, (1, 0, 2))                       # (H, Tj, C)
    out_w = jnp.einsum('ijw,iwc->ijc', p_w.astype(v.dtype), v,
                       preferred_element_type=jnp.float32)        # (H, Tj, C)

    x_tile = x_ref[0].astype(jnp.float32)
    out = (out_h + out_w) * ginv[:, :, None] + x_tile
    o_ref[0] = out.astype(o_ref.dtype)


def _vmem_capacity_bytes():
    """Per-core VMEM capacity; falls back to the v7x value if the query fails."""
    try:
        return int(pltpu.get_tpu_info().vmem_capacity_bytes)
    except Exception:
        return 64 * 1024 * 1024


def _vmem_estimate(H, W, C, tile_w, itemsize):
    """Peak VMEM estimate including the f32 per-step temporaries."""
    f32 = 4
    return (
        2 * 2 * H * W * C * itemsize          # K, V full image (double-buffered)
        + 3 * 2 * H * tile_w * C * itemsize   # q / x / out column tiles (2 bufs)
        + 3 * tile_w * H * C * itemsize       # q_t / k_t / v_t in-kernel tiles
        + 2 * tile_w * H * H * f32            # e_h + p_h
        + 2 * H * tile_w * W * f32            # e_w + p_w
        + 3 * H * tile_w * C * f32            # out_h / out_w / out f32 temps
        + H * H * f32                         # diag mask
    )


def _pick_tile_w(H, W, C, itemsize, vmem_cap):
    """Largest column tile (<=256, MXU-friendly) whose working set fits VMEM."""
    budget = int(0.7 * vmem_cap)
    cands = [c for c in (256, 128, 64, 32, 16, 8) if c <= W and W % c == 0]
    if not cands:
        cands = [W]
    for cand in cands:
        if _vmem_estimate(H, W, C, cand, itemsize) <= budget:
            return cand
    return cands[-1]


def criss_cross_attention_nhwc(x_nhwc, wq, bq, wk, bk, wv, bv, gamma, *,
                               tile_w=None):
    """Criss-cross attention on an NHWC tensor.  w*: (C_out, C_in) 1x1-conv
    weights.  QKV projection is hoisted to a single fused XLA einsum (per perf
    review); the Pallas kernel does the criss-cross attention proper."""
    B, H, W, C = x_nhwc.shape
    dtype = x_nhwc.dtype
    isz = jnp.dtype(dtype).itemsize

    vmem_cap = _vmem_capacity_bytes()
    if tile_w is None:
        tile_w = _pick_tile_w(H, W, C, isz, vmem_cap)
    assert W % tile_w == 0, "tile_w must divide W"
    assert tile_w == W or tile_w % 8 == 0, "tile_w must be sublane-aligned"
    n_wj = W // tile_w

    # Hoisted fused QKV projection: y = x @ [Wq^T | Wk^T | Wv^T] + [bq|bk|bv].
    wqkv = jnp.concatenate([wq.T, wk.T, wv.T], axis=1).astype(dtype)    # (C, 3C)
    bqkv = jnp.concatenate([bq, bk, bv]).astype(jnp.float32)            # (3C,)
    qkv = jnp.einsum('bhwc,cd->bhwd', x_nhwc, wqkv,
                     preferred_element_type=jnp.float32) + bqkv
    qkv = qkv.astype(dtype)
    q, k, v = qkv[..., :C], qkv[..., C:2 * C], qkv[..., 2 * C:]

    # Additive diagonal mask for the H-direction self term (stands in for -inf;
    # must stay f32 so exp underflows to exactly 0).
    diag = -1e30 * jnp.eye(H, dtype=jnp.float32)
    gamma_arr = jnp.reshape(jnp.asarray(gamma, jnp.float32), (1, 1))

    # VMEM limit from the (now accurate) estimate, capped by the actual chip
    # capacity (~108 MiB usable on 128 MiB parts, ~54 MiB on v7x).
    vmem_est = _vmem_estimate(H, W, C, tile_w, isz)
    cap = int(0.85 * vmem_cap)
    vmem_limit = int(min(max(int(1.25 * vmem_est), 32 * 1024 * 1024), cap))

    kernel = functools.partial(_cca_kernel, tile_w=tile_w)
    return pl.pallas_call(
        kernel,
        out_shape=jax.ShapeDtypeStruct((B, H, W, C), dtype),
        grid_spec=pltpu.PrefetchScalarGridSpec(
            num_scalar_prefetch=0,
            grid=(B, n_wj),
            in_specs=[
                pl.BlockSpec((1, H, tile_w, C), lambda b, j: (b, 0, j, 0)),  # Q tile
                pl.BlockSpec((1, H, W, C), lambda b, j: (b, 0, 0, 0)),       # K (resident over j)
                pl.BlockSpec((1, H, W, C), lambda b, j: (b, 0, 0, 0)),       # V (resident over j)
                pl.BlockSpec((1, H, tile_w, C), lambda b, j: (b, 0, j, 0)),  # x residual tile
                pl.BlockSpec((H, H), lambda b, j: (0, 0)),                   # diag mask bias
                pl.BlockSpec(memory_space=pltpu.MemorySpace.SMEM),           # gamma
            ],
            out_specs=pl.BlockSpec((1, H, tile_w, C), lambda b, j: (b, 0, j, 0)),
        ),
        compiler_params=pltpu.CompilerParams(
            # No scratch state is carried across j anymore, so both axes can
            # be split across cores (v7x has 2 TensorCores per chip).
            dimension_semantics=("parallel", "parallel"),
            vmem_limit_bytes=vmem_limit,
        ),
    )(q, k, v, x_nhwc, diag, gamma_arr)


def criss_cross_attention(x_nchw, wq, bq, wk, bk, wv, bv, gamma, *, tile_w=None):
    """NCHW (PyTorch-layout) compatibility wrapper.  Each transpose below is a
    full HBM round trip; keep the surrounding model NHWC and call
    criss_cross_attention_nhwc directly to avoid it."""
    x_nhwc = jnp.transpose(x_nchw, (0, 2, 3, 1))
    out = criss_cross_attention_nhwc(x_nhwc, wq, bq, wk, bk, wv, bv, gamma,
                                     tile_w=tile_w)
    return jnp.transpose(out, (0, 3, 1, 2))


def reference(x, wq, bq, wk, bk, wv, bv, gamma):
    """Pure-JAX mirror of the PyTorch forward (NCHW)."""
    B, C, H, W = x.shape

    def conv1x1(z, w, b):
        return jnp.einsum('bchw,oc->bohw', z, w) + b[None, :, None, None]

    q = conv1x1(x, wq, bq)
    k = conv1x1(x, wk, bk)
    v = conv1x1(x, wv, bv)

    e_H = jnp.einsum('bcij,bchj->bijh', q, k)                     # (B, H, W, H)
    diag = jnp.eye(H, dtype=bool)
    e_H = jnp.where(diag[None, :, None, :], -jnp.inf, e_H)
    e_W = jnp.einsum('bcij,bciw->bijw', q, k)                     # (B, H, W, W)

    att = jax.nn.softmax(jnp.concatenate([e_H, e_W], axis=-1), axis=-1)
    att_H, att_W = att[..., :H], att[..., H:]

    out_H = jnp.einsum('bijh,bchj->bcij', att_H, v)
    out_W = jnp.einsum('bijw,bciw->bcij', att_W, v)
    return gamma * (out_H + out_W) + x


if __name__ == "__main__":
    B, C, H, W = 2, 4, 16, 16
    key = jax.random.PRNGKey(0)
    ks = jax.random.split(key, 7)

    x = jax.random.normal(ks[0], (B, C, H, W), jnp.float32)
    wq = 0.3 * jax.random.normal(ks[1], (C, C), jnp.float32)      # 1x1 conv (O, I)
    wk = 0.3 * jax.random.normal(ks[2], (C, C), jnp.float32)
    wv = 0.3 * jax.random.normal(ks[3], (C, C), jnp.float32)
    bq = 0.1 * jax.random.normal(ks[4], (C,), jnp.float32)
    bk = 0.1 * jax.random.normal(ks[5], (C,), jnp.float32)
    bv = 0.1 * jax.random.normal(ks[6], (C,), jnp.float32)
    # PyTorch __init__ sets gamma = 0 (output == x); use a nonzero value so the
    # attention path actually contributes and is numerically exercised.
    gamma = jnp.float32(0.5)

    # tile_w=8 only to exercise the column-tile grid axis at this toy W=16;
    # production sizes auto-select the largest VMEM-fitting tile (target 256).
    out = criss_cross_attention(x, wq, bq, wk, bk, wv, bv, gamma, tile_w=8)
    out = jax.block_until_ready(out)

    ref = reference(x, wq, bq, wk, bk, wv, bv, gamma)
    assert out.shape == x.shape
    err = float(jnp.max(jnp.abs(out - ref)))
    # 5e-3 tolerance: everything is f32 except the approx (EUP) reciprocal of
    # the softmax denominator.
    assert err < 5e-3, f"max abs err {err}"
    print("KERNEL_OK")
</pallas_src>

<mosaic_0001>
module attributes {stable_mosaic.version = 11 : i64} {
  func.func @_cca_kernel(%arg0: i32, %arg1: i32, %arg2: memref<1x16x8x4xf32, #tpu.memory_space<vmem>>, %arg3: memref<1x16x16x4xf32, #tpu.memory_space<vmem>>, %arg4: memref<1x16x16x4xf32, #tpu.memory_space<vmem>>, %arg5: memref<1x16x8x4xf32, #tpu.memory_space<vmem>>, %arg6: memref<16x16xf32, #tpu.memory_space<vmem>>, %arg7: memref<1x1xf32, #tpu.memory_space<smem>>, %arg8: memref<1x16x8x4xf32, #tpu.memory_space<vmem>>) attributes {dimension_semantics = [#tpu.dimension_semantics<parallel>, #tpu.dimension_semantics<parallel>], iteration_bounds = array<i64: 2, 2>, scalar_prefetch = 0 : i64, scratch_operands = 0 : i64, tpu.core_type = #tpu.core_type<tc>, window_params = [{transform_indices = @transform_0, window_bounds = array<i64: 1, 16, 8, 4>}, {transform_indices = @transform_1, window_bounds = array<i64: 1, 16, 16, 4>}, {transform_indices = @transform_2, window_bounds = array<i64: 1, 16, 16, 4>}, {transform_indices = @transform_3, window_bounds = array<i64: 1, 16, 8, 4>}, {pipeline_mode = #tpu.pipeline_mode<synchronous>, transform_indices = @transform_4, window_bounds = array<i64: 16, 16>}, {transform_indices = @transform_5, window_bounds = array<i64: 1, 1>}, {transform_indices = @transform_6, window_bounds = array<i64: 1, 16, 8, 4>}]} {
    %c8_i32 = arith.constant 8 : i32
    %0 = arith.muli %arg1, %c8_i32 : i32
    %1 = tpu.assume_multiple %0, 8 : i32
    %c0 = arith.constant 0 : index
    %c0_0 = arith.constant 0 : index
    %c0_1 = arith.constant 0 : index
    %c0_2 = arith.constant 0 : index
    %2 = vector.load %arg2[%c0, %c0_0, %c0_1, %c0_2] : memref<1x16x8x4xf32, #tpu.memory_space<vmem>>, vector<1x16x8x4xf32>
    %3 = vector.shape_cast %2 : vector<1x16x8x4xf32> to vector<16x8x4xf32>
    %c0_3 = arith.constant 0 : index
    %c0_4 = arith.constant 0 : index
    %c0_5 = arith.constant 0 : index
    %c0_6 = arith.constant 0 : index
    %4 = vector.load %arg3[%c0_3, %c0_4, %c0_5, %c0_6] : memref<1x16x16x4xf32, #tpu.memory_space<vmem>>, vector<1x16x16x4xf32>
    %5 = vector.shape_cast %4 : vector<1x16x16x4xf32> to vector<16x16x4xf32>
    %c0_7 = arith.constant 0 : index
    %c0_8 = arith.constant 0 : index
    %c0_9 = arith.constant 0 : index
    %c0_10 = arith.constant 0 : index
    %6 = vector.load %arg4[%c0_7, %c0_8, %c0_9, %c0_10] : memref<1x16x16x4xf32, #tpu.memory_space<vmem>>, vector<1x16x16x4xf32>
    %7 = vector.shape_cast %6 : vector<1x16x16x4xf32> to vector<16x16x4xf32>
    %c0_11 = arith.constant 0 : index
    %c0_12 = arith.constant 0 : index
    %8 = arith.index_cast %1 : i32 to index
    %c0_13 = arith.constant 0 : index
    %9 = vector.load %arg3[%c0_11, %c0_12, %8, %c0_13] : memref<1x16x16x4xf32, #tpu.memory_space<vmem>>, vector<1x16x8x4xf32>
    %10 = vector.shape_cast %9 : vector<1x16x8x4xf32> to vector<16x8x4xf32>
    %c0_14 = arith.constant 0 : index
    %c0_15 = arith.constant 0 : index
    %11 = arith.index_cast %1 : i32 to index
    %c0_16 = arith.constant 0 : index
    %12 = vector.load %arg4[%c0_14, %c0_15, %11, %c0_16] : memref<1x16x16x4xf32, #tpu.memory_space<vmem>>, vector<1x16x8x4xf32>
    %13 = vector.shape_cast %12 : vector<1x16x8x4xf32> to vector<16x8x4xf32>
    %14 = tpu.transpose %3, [1, 0, 2] : vector<16x8x4xf32> -> vector<8x16x4xf32>
    %15 = tpu.transpose %10, [1, 0, 2] : vector<16x8x4xf32> -> vector<8x16x4xf32>
    %16 = tpu.transpose %13, [1, 0, 2] : vector<16x8x4xf32> -> vector<8x16x4xf32>
    "tpu.trace_start"() <{level = 10 : i32, message = "jic,jhc->jih"}> : () -> ()
    %cst = arith.constant dense<0.000000e+00> : vector<8x16x16xf32>
    %17 = tpu.matmul %14, %15, %cst {dimension_numbers = #tpu.dot_dimension_numbers<[2], [2], [1], [1], [0, 0, 0, 1, 1, 1], [0], [0]>} : vector<8x16x4xf32>, vector<8x16x4xf32>, vector<8x16x16xf32> -> vector<8x16x16xf32>
    "tpu.trace_stop"() : () -> ()
    %c0_17 = arith.constant 0 : index
    %c0_18 = arith.constant 0 : index
    %18 = vector.load %arg6[%c0_17, %c0_18] : memref<16x16xf32, #tpu.memory_space<vmem>>, vector<16x16xf32>
    %19 = vector.shape_cast %18 : vector<16x16xf32> to vector<1x16x16xf32>
    %20 = vector.broadcast %19 : vector<1x16x16xf32> to vector<8x16x16xf32>
    %21 = arith.addf %17, %20 : vector<8x16x16xf32>
    "tpu.trace_start"() <{level = 10 : i32, message = "ijc,iwc->ijw"}> : () -> ()
    %cst_19 = arith.constant dense<0.000000e+00> : vector<16x8x16xf32>
    %22 = tpu.matmul %3, %5, %cst_19 {dimension_numbers = #tpu.dot_dimension_numbers<[2], [2], [1], [1], [0, 0, 0, 1, 1, 1], [0], [0]>} : vector<16x8x4xf32>, vector<16x16x4xf32>, vector<16x8x16xf32> -> vector<16x8x16xf32>
    "tpu.trace_stop"() : () -> ()
    %cst_20 = arith.constant dense<0xFF800000> : vector<8x16xf32>
    %23 = vector.multi_reduction <maximumf>, %21, %cst_20 [2] : vector<8x16x16xf32> to vector<8x16xf32>
    %24 = tpu.transpose %23, [1, 0] : vector<8x16xf32> -> vector<16x8xf32>
    %cst_21 = arith.constant dense<0xFF800000> : vector<16x8xf32>
    %25 = vector.multi_reduction <maximumf>, %22, %cst_21 [2] : vector<16x8x16xf32> to vector<16x8xf32>
    %26 = arith.maximumf %24, %25 : vector<16x8xf32>
    %27 = tpu.transpose %26, [1, 0] : vector<16x8xf32> -> vector<8x16xf32>
    %28 = vector.shape_cast %27 : vector<8x16xf32> to vector<8x16x1xf32>
    %29 = vector.broadcast %28 : vector<8x16x1xf32> to vector<8x16x16xf32>
    %30 = arith.subf %21, %29 : vector<8x16x16xf32>
    %31 = math.exp %30 : vector<8x16x16xf32>
    %32 = vector.shape_cast %26 : vector<16x8xf32> to vector<16x8x1xf32>
    %33 = vector.broadcast %32 : vector<16x8x1xf32> to vector<16x8x16xf32>
    %34 = arith.subf %22, %33 : vector<16x8x16xf32>
    %35 = math.exp %34 : vector<16x8x16xf32>
    %cst_22 = arith.constant dense<0.000000e+00> : vector<8x16xf32>
    %36 = vector.multi_reduction <add>, %31, %cst_22 [2] : vector<8x16x16xf32> to vector<8x16xf32>
    %37 = tpu.transpose %36, [1, 0] : vector<8x16xf32> -> vector<16x8xf32>
    %cst_23 = arith.constant dense<0.000000e+00> : vector<16x8xf32>
    %38 = vector.multi_reduction <add>, %35, %cst_23 [2] : vector<16x8x16xf32> to vector<16x8xf32>
    %39 = arith.addf %37, %38 : vector<16x8xf32>
    %c0_24 = arith.constant 0 : index
    %c0_25 = arith.constant 0 : index
    %40 = memref.load %arg7[%c0_24, %c0_25] : memref<1x1xf32, #tpu.memory_space<smem>>
    %41 = tpu.reciprocal %39 {approx = true} : vector<16x8xf32> -> vector<16x8xf32>
    %42 = vector.broadcast %40 : f32 to vector<16x8xf32>
    %43 = arith.mulf %42, %41 : vector<16x8xf32>
    "tpu.trace_start"() <{level = 10 : i32, message = "jih,jhc->jic"}> : () -> ()
    %cst_26 = arith.constant dense<0.000000e+00> : vector<8x16x4xf32>
    %44 = tpu.matmul %31, %16, %cst_26 {dimension_numbers = #tpu.dot_dimension_numbers<[2], [1], [1], [2], [0, 0, 0, 1, 1, 2], [0], [0]>} : vector<8x16x16xf32>, vector<8x16x4xf32>, vector<8x16x4xf32> -> vector<8x16x4xf32>
    "tpu.trace_stop"() : () -> ()
    %45 = tpu.transpose %44, [1, 0, 2] : vector<8x16x4xf32> -> vector<16x8x4xf32>
    "tpu.trace_start"() <{level = 10 : i32, message = "ijw,iwc->ijc"}> : () -> ()
    %cst_27 = arith.constant dense<0.000000e+00> : vector<16x8x4xf32>
    %46 = tpu.matmul %35, %7, %cst_27 {dimension_numbers = #tpu.dot_dimension_numbers<[2], [1], [1], [2], [0, 0, 0, 1, 1, 2], [0], [0]>} : vector<16x8x16xf32>, vector<16x16x4xf32>, vector<16x8x4xf32> -> vector<16x8x4xf32>
    "tpu.trace_stop"() : () -> ()
    %c0_28 = arith.constant 0 : index
    %c0_29 = arith.constant 0 : index
    %c0_30 = arith.constant 0 : index
    %c0_31 = arith.constant 0 : index
    %47 = vector.load %arg5[%c0_28, %c0_29, %c0_30, %c0_31] : memref<1x16x8x4xf32, #tpu.memory_space<vmem>>, vector<1x16x8x4xf32>
    %48 = vector.shape_cast %47 : vector<1x16x8x4xf32> to vector<16x8x4xf32>
    %49 = arith.addf %45, %46 : vector<16x8x4xf32>
    %50 = vector.shape_cast %43 : vector<16x8xf32> to vector<16x8x1xf32>
    %51 = vector.broadcast %50 : vector<16x8x1xf32> to vector<16x8x4xf32>
    %52 = arith.mulf %49, %51 : vector<16x8x4xf32>
    %53 = arith.addf %52, %48 : vector<16x8x4xf32>
    %c0_32 = arith.constant 0 : index
    %c0_33 = arith.constant 0 : index
    %c0_34 = arith.constant 0 : index
    %c0_35 = arith.constant 0 : index
    %54 = vector.load %arg8[%c0_32, %c0_33, %c0_34, %c0_35] : memref<1x16x8x4xf32, #tpu.memory_space<vmem>>, vector<1x16x8x4xf32>
    %55 = vector.shape_cast %54 : vector<1x16x8x4xf32> to vector<16x8x4xf32>
    %56 = vector.shape_cast %53 : vector<16x8x4xf32> to vector<1x16x8x4xf32>
    tpu.vector_store %arg8[%c0_32, %c0_33, %c0_34, %c0_35], %56 {strides = array<i32>} : memref<1x16x8x4xf32, #tpu.memory_space<vmem>>, vector<1x16x8x4xf32>,
    return
  }
  func.func @transform_0(%arg0: i32, %arg1: i32) -> (i32, i32, i32, i32) {
    %c0_i32 = arith.constant 0 : i32
    %c0_i32_0 = arith.constant 0 : i32
    %c0_i32_1 = arith.constant 0 : i32
    return %arg0, %c0_i32, %arg1, %c0_i32_0 : i32, i32, i32, i32
  }
  func.func @transform_1(%arg0: i32, %arg1: i32) -> (i32, i32, i32, i32) {
    %c0_i32 = arith.constant 0 : i32
    %c0_i32_0 = arith.constant 0 : i32
    %c0_i32_1 = arith.constant 0 : i32
    %c0_i32_2 = arith.constant 0 : i32
    return %arg0, %c0_i32, %c0_i32_0, %c0_i32_1 : i32, i32, i32, i32
  }
  func.func @transform_2(%arg0: i32, %arg1: i32) -> (i32, i32, i32, i32) {
    %c0_i32 = arith.constant 0 : i32
    %c0_i32_0 = arith.constant 0 : i32
    %c0_i32_1 = arith.constant 0 : i32
    %c0_i32_2 = arith.constant 0 : i32
    return %arg0, %c0_i32, %c0_i32_0, %c0_i32_1 : i32, i32, i32, i32
  }
  func.func @transform_3(%arg0: i32, %arg1: i32) -> (i32, i32, i32, i32) {
    %c0_i32 = arith.constant 0 : i32
    %c0_i32_0 = arith.constant 0 : i32
    %c0_i32_1 = arith.constant 0 : i32
    return %arg0, %c0_i32, %arg1, %c0_i32_0 : i32, i32, i32, i32
  }
  func.func @transform_4(%arg0: i32, %arg1: i32) -> (i32, i32) {
    %c0_i32 = arith.constant 0 : i32
    %c0_i32_0 = arith.constant 0 : i32
    %c0_i32_1 = arith.constant 0 : i32
    return %c0_i32, %c0_i32_0 : i32, i32
  }
  func.func @transform_5(%arg0: i32, %arg1: i32) -> (i32, i32) {
    %c0_i32 = arith.constant 0 : i32
    %c0_i32_0 = arith.constant 0 : i32
    %c0_i32_1 = arith.constant 0 : i32
    return %c0_i32, %c0_i32_0 : i32, i32
  }
  func.func @transform_6(%arg0: i32, %arg1: i32) -> (i32, i32, i32, i32) {
    %c0_i32 = arith.constant 0 : i32
    %c0_i32_0 = arith.constant 0 : i32
    %c0_i32_1 = arith.constant 0 : i32
    return %arg0, %c0_i32, %arg1, %c0_i32_0 : i32, i32, i32, i32
  }
}

</mosaic_0001>

<bundles_post_ra>
// kernel: tpu_custom_call.1
= control target key start
LH: loop header
LB: loop body
LE: loop exit
PB: predicated region body
PF: predicated region fallthrough
CT: control target
= control target key end

     0   :  { %s6118_s0 = inlined_call_operand.vmem [shape: f32[2,16,16,4], index: 0, kind: input, shape index: {}]   ;;  %s6119_s1 = inlined_call_operand.vmem [shape: f32[2,16,16,4], index: 1, kind: input, shape index: {}]   ;;  %s6120_s2 = inlined_call_operand.vmem [shape: f32[2,16,16,4], index: 2, kind: input, shape index: {}]   ;;  %s6121_s3 = inlined_call_operand.vmem [shape: f32[2,16,16,4], index: 3, kind: input, shape index: {}]   ;;  %s6122_s4 = inlined_call_operand.vmem [shape: f32[16,16], index: 4, kind: input, shape index: {}]   ;;  %s6123_s5 = inlined_call_operand.<no memory space> [shape: f32[1,1], index: 5, kind: input, shape index: {}]   ;;  %s6124_s6 = inlined_call_operand.vmem [shape: f32[2,16,16,4], index: 6, kind: output, shape index: {}]  }
   0x1   :  { %11 = sst [smem:[#allocation2]] %s6123_s5 }
   0x2   :  { %s4486_s23 = smov 0   ;;  %s4488_s24 = smov 0  }
   0x3   :  { %s4490_s25 = smov 0   ;;  %s4492_s26 = smov 0  }
   0x4   :  { %s4494_s27 = smov 0   ;;  %s4496_s28 = smov 0  }
   0x5   :  { %s4498_s29 = smov 0  }
   0x6 LB: > { %s26_s5 = sadd.s32 1, %s4436_s27  ;;  %s29_s30 = sadd.s32 1, %s4440_s28  ;;  %s4444_s29 = sphi %s4498_s29, %s17_s29   ;;  %s4440_s28 = sphi %s4496_s28, %s6185_s28   ;;  %s4436_s27 = sphi %s4494_s27, %s6184_s27   ;;  %s4432_s26 = sphi %s4492_s26, %s6183_s26   ;;  %s4428_s25 = sphi %s4490_s25, %s6182_s25   ;;  %s4424_s24 = sphi %s4488_s24, %s6181_s24   ;;  %s4420_s23 = sphi %s4486_s23, %s6180_s23  }
   0x7   : > { %p27_p0 = scmp.ge.s32.totalorder %s26_s5, 2  ;;  %s4108_s7 = sadd.s32 4294967295, %s4444_s29  }
   0x8   : > { %p45_p1 = scmp.ne.s32.totalorder %s4424_s24, %s4420_s23  ;;  %p46_p2 = scmp.eq.s32.totalorder %s4444_s29, 0 }
   0x9   : > { %s6187_s5 = smov (%p27_p0, %s26_s5), 0  ;;  %s6189_s30 = smov (!%p27_p0, %s29_s30), %s4440_s28 }
   0xa   : > { %p31_p3 = scmp.ge.s32.totalorder %s6189_s30, 2  ;;  %p199_p4 = scmp.eq.s32.totalorder %s4108_s7, 3 }
   0xb   : > { %s34_s8 = ssub.s32 %s4436_s27, %s6187_s5  ;;  %p4532_p5 = por %p46_p2, %p45_p1 }
   0xc   : > { %s6191_s30 = smov (%p31_p3, %s6189_s30), 0  ;;  %p4538_p6 = por %p199_p4, %p45_p1 }
   0xd   : > { %s33_s11 = ssub.s32 %s4440_s28, %s6191_s30  ;;  %s38_s13 = sadd.s32 1, %s4424_s24 }
   0xe   : > { %s35_s12 = sor.u32 %s34_s8, %s33_s11  ;;  %p4111_p8 = scmp.ge.s32.totalorder %s4444_s29, 4 }
   0xf   : > { %p36_p7 = scmp.eq.s32.totalorder %s35_s12, 0 }
  0x10   : > { %227 = sbr.rel (%p4111_p8) target bundleno = 65 (0x41), region = 24 }
  0x11   : > { %s4546_s14 = scalar_select %p36_p7, %s4424_s24, %s38_s13  }
  0x15   : > { %230 = sbr.rel (!%p4532_p5) target bundleno = 43 (0x2b), region = 28  ;;  %s232_s15 = sand.u32 (%p4532_p5), 1, %s4424_s24  }
  0x16   : > { %s4113_s16 = sshll.u32 (%p4532_p5), %s4440_s28, 5  ;;  %s4112_s17 = sshll.u32 (%p4532_p5), %s232_s15, 7 }
  0x17   : > { %s236_s18 = sadd.s32 (%p4532_p5), %s4436_s27, %s4113_s16  ;;  %s234_s7 = scalar_lea.vmem (%p4532_p5), [#allocation3], %s4112_s17 }
  0x18   : > { %s4114_s19 = sshll.u32 (%p4532_p5), %s236_s18, 3 }
  0x19   : > { %s4557_s22 = scalar_lea.vmem (%p4532_p5), %s6118_s0, %s4114_s19 }
  0x1a   : > { %v297_v0 = vld [vmem:[%s4557_s22] sm:$0xff]  ;;  %v299_v1 = vld [vmem:[%s4557_s22 + $0x10] sm:$0xff] }
  0x1b   : > { %v301_v2 = vld [vmem:[%s4557_s22 + $0x20] sm:$0xff]  ;;  %298 = vst [vmem:[%s234_s7] sm:$0xff] %v297_v0  ;;  %v303_v3 = vld [vmem:[%s4557_s22 + $0x30] sm:$0xff] }
  0x1c   : > { %300 = vst [vmem:[%s234_s7 + $0x8] sm:$0xff] %v299_v1  ;;  %v305_v4 = vld [vmem:[%s4557_s22 + $0x40] sm:$0xff]  ;;  %v307_v5 = vld [vmem:[%s4557_s22 + $0x50] sm:$0xff] }
  0x1d   : > { %302 = vst [vmem:[%s234_s7 + $0x10] sm:$0xff] %v301_v2  ;;  %v309_v6 = vld [vmem:[%s4557_s22 + $0x60] sm:$0xff]  ;;  %v311_v7 = vld [vmem:[%s4557_s22 + $0x70] sm:$0xff] }
  0x1e   : > { %304 = vst [vmem:[%s234_s7 + $0x18] sm:$0xff] %v303_v3  ;;  %v313_v8 = vld [vmem:[%s4557_s22 + $0x80] sm:$0xff]  ;;  %v315_v9 = vld [vmem:[%s4557_s22 + $0x90] sm:$0xff] }
  0x1f   : > { %306 = vst [vmem:[%s234_s7 + $0x20] sm:$0xff] %v305_v4  ;;  %v317_v10 = vld [vmem:[%s4557_s22 + $0xa0] sm:$0xff]  ;;  %v319_v11 = vld [vmem:[%s4557_s22 + $0xb0] sm:$0xff] }
  0x20   : > { %308 = vst [vmem:[%s234_s7 + $0x28] sm:$0xff] %v307_v5  ;;  %v321_v12 = vld [vmem:[%s4557_s22 + $0xc0] sm:$0xff]  ;;  %v323_v13 = vld [vmem:[%s4557_s22 + $0xd0] sm:$0xff] }
  0x21   : > { %310 = vst [vmem:[%s234_s7 + $0x30] sm:$0xff] %v309_v6  ;;  %v325_v14 = vld [vmem:[%s4557_s22 + $0xe0] sm:$0xff]  ;;  %v327_v15 = vld [vmem:[%s4557_s22 + $0xf0] sm:$0xff] }
  0x22   : > { %312 = vst [vmem:[%s234_s7 + $0x38] sm:$0xff] %v311_v7 }
  0x23   : > { %314 = vst [vmem:[%s234_s7 + $0x40] sm:$0xff] %v313_v8 }
  0x24   : > { %316 = vst [vmem:[%s234_s7 + $0x48] sm:$0xff] %v315_v9 }
  0x25   : > { %318 = vst [vmem:[%s234_s7 + $0x50] sm:$0xff] %v317_v10 }
  0x26   : > { %320 = vst [vmem:[%s234_s7 + $0x58] sm:$0xff] %v319_v11 }
  0x27   : > { %322 = vst [vmem:[%s234_s7 + $0x60] sm:$0xff] %v321_v12 }
  0x28   : > { %324 = vst [vmem:[%s234_s7 + $0x68] sm:$0xff] %v323_v13 }
  0x29   : > { %326 = vst [vmem:[%s234_s7 + $0x70] sm:$0xff] %v325_v14 }
  0x2a   : > { %328 = vst [vmem:[%s234_s7 + $0x78] sm:$0xff] %v327_v15 }
  0x2b PF: > { %350 = sbr.rel (!%p4532_p5) target bundleno = 65 (0x41), region = 74  ;;  %s352_s8 = sand.u32 (%p4532_p5), 1, %s4424_s24  }
  0x2c   : > { %s4116_s11 = sshll.u32 (%p4532_p5), %s4440_s28, 5  ;;  %s4115_s12 = sshll.u32 (%p4532_p5), %s352_s8, 7 }
  0x2d   : > { %s356_s13 = sadd.s32 (%p4532_p5), %s4436_s27, %s4116_s11  ;;  %s354_s9 = scalar_lea.vmem (%p4532_p5), [#allocation4], %s4115_s12 }
  0x2e   : > { %s4117_s15 = sshll.u32 (%p4532_p5), %s356_s13, 3 }
  0x2f   : > { %s4583_s18 = scalar_lea.vmem (%p4532_p5), %s6121_s3, %s4117_s15 }
  0x30   : > { %v417_v16 = vld [vmem:[%s4583_s18] sm:$0xff]  ;;  %v419_v17 = vld [vmem:[%s4583_s18 + $0x10] sm:$0xff] }
  0x31   : > { %v421_v18 = vld [vmem:[%s4583_s18 + $0x20] sm:$0xff]  ;;  %418 = vst [vmem:[%s354_s9] sm:$0xff] %v417_v16  ;;  %v423_v19 = vld [vmem:[%s4583_s18 + $0x30] sm:$0xff] }
  0x32   : > { %420 = vst [vmem:[%s354_s9 + $0x8] sm:$0xff] %v419_v17  ;;  %v425_v20 = vld [vmem:[%s4583_s18 + $0x40] sm:$0xff]  ;;  %v427_v21 = vld [vmem:[%s4583_s18 + $0x50] sm:$0xff] }
  0x33   : > { %422 = vst [vmem:[%s354_s9 + $0x10] sm:$0xff] %v421_v18  ;;  %v429_v22 = vld [vmem:[%s4583_s18 + $0x60] sm:$0xff]  ;;  %v431_v23 = vld [vmem:[%s4583_s18 + $0x70] sm:$0xff] }
  0x34   : > { %424 = vst [vmem:[%s354_s9 + $0x18] sm:$0xff] %v423_v19  ;;  %v433_v24 = vld [vmem:[%s4583_s18 + $0x80] sm:$0xff]  ;;  %v435_v25 = vld [vmem:[%s4583_s18 + $0x90] sm:$0xff] }
  0x35   : > { %426 = vst [vmem:[%s354_s9 + $0x20] sm:$0xff] %v425_v20  ;;  %v437_v26 = vld [vmem:[%s4583_s18 + $0xa0] sm:$0xff]  ;;  %v439_v27 = vld [vmem:[%s4583_s18 + $0xb0] sm:$0xff] }
  0x36   : > { %428 = vst [vmem:[%s354_s9 + $0x28] sm:$0xff] %v427_v21  ;;  %v441_v28 = vld [vmem:[%s4583_s18 + $0xc0] sm:$0xff]  ;;  %v443_v29 = vld [vmem:[%s4583_s18 + $0xd0] sm:$0xff] }
  0x37   : > { %430 = vst [vmem:[%s354_s9 + $0x30] sm:$0xff] %v429_v22  ;;  %v445_v30 = vld [vmem:[%s4583_s18 + $0xe0] sm:$0xff]  ;;  %v447_v31 = vld [vmem:[%s4583_s18 + $0xf0] sm:$0xff] }
  0x38   : > { %432 = vst [vmem:[%s354_s9 + $0x38] sm:$0xff] %v431_v23 }
  0x39   : > { %434 = vst [vmem:[%s354_s9 + $0x40] sm:$0xff] %v433_v24 }
  0x3a   : > { %436 = vst [vmem:[%s354_s9 + $0x48] sm:$0xff] %v435_v25 }
  0x3b   : > { %438 = vst [vmem:[%s354_s9 + $0x50] sm:$0xff] %v437_v26 }
  0x3c   : > { %440 = vst [vmem:[%s354_s9 + $0x58] sm:$0xff] %v439_v27 }
  0x3d   : > { %442 = vst [vmem:[%s354_s9 + $0x60] sm:$0xff] %v441_v28 }
  0x3e   : > { %444 = vst [vmem:[%s354_s9 + $0x68] sm:$0xff] %v443_v29 }
  0x3f   : > { %446 = vst [vmem:[%s354_s9 + $0x70] sm:$0xff] %v445_v30 }
  0x40   : > { %448 = vst [vmem:[%s354_s9 + $0x78] sm:$0xff] %v447_v31 }
  0x41 PF: > { %p4118_p9 = scmp.ge.s32.totalorder %s4444_s29, 1  ;;  %p453_p10 = scmp.lt.s32.totalorder %s4444_s29, 5 }
  0x43   : > { %p454_p11 = pnand %p4118_p9, %p453_p10 }
  0x45   : > { %457 = sbr.rel (%p454_p11) target bundleno = 1588 (0x634), region = 112 }
  0x4a   : > { %p509_p12 = scmp.lt.s32.totalorder %s4432_s26, 1  ;;  %s460_s19 = sand.u32 1, %s4420_s23   ;;  %v4446_v32 = vmov 1983009808   ;;  %v4447_v34 = vmov 1934713408  }
  0x4b   : > { %v640_v33 = vunpack.c.l.s4 %v4446_v32  ;;  %s4126_s21 = sshll.u32 %s4428_s25, 3  ;;  %v688_v35 = vunpack.c.l.s4 %v4447_v34  ;;  %s4609_s22 = sshll.u32 %s460_s19, 7  ;;  %vm635_vm0 = vcmask 1047556   ;;  %vm1309_vm1 = vcmask 31744  }
  0x4c   : > { %s4606_s20 = scalar_select %p509_p12, %s4432_s26, 1  ;;  %vm2054_vm2 = vcmask 130048   ;;  %vm2124_vm3 = vcmask 130112   ;;  %vm2147_vm4 = vcmask 1041409   ;;  %vm2149_vm5 = vcmask 1042434  }
  0x4d   : > { %s4620_s23 = scalar_lea.vmem [#allocation3], %s4609_s22  ;;  %v4633_v38 = vunpack.c.0.s8 %v640_v33  ;;  %v4651_v45 = vunpack.c.0.s8 %v688_v35  ;;  %vm2151_vm6 = vcmask 1043459   ;;  %vm2153_vm7 = vcmask 1044484  }
  0x4e   : > { %s4244_s7 = sshll.u32 %s4606_s20, 8  ;;  %v4623_v36 = vld [vmem:[%s4620_s23] sm:$0xff]  ;;  %v4626_v37 = vld [vmem:[%s4620_s23 + $0x10] sm:$0xff]  ;;  %v4636_v39 = vld [vmem:[%s4620_s23 + $0x18] sm:$0xff]  ;;  %vm2155_vm8 = vcmask 1045509   ;;  %vm2157_vm9 = vcmask 1046534  }
  0x4f   : > { %s4617_s12 = scalar_lea.vmem %s6119_s1, %s4244_s7  ;;  %v4639_v40 = vld [vmem:[%s4620_s23 + $0x20] sm:$0xff]  ;;  %v634_v41 = vrot.slane %v4626_v37, 4  ;;  %v637_v46 = vrot.slane %v4623_v36, 4  ;;  %v647_v47 = vrot.slane %v4636_v39, 4  ;;  %vm2159_vm10 = vcmask 1047559   ;;  %s5343_s8 = scalar_lea.vmem %s6120_s2, %s4244_s7 }
  0x50   : > { %s4631_s13 = scalar_lea.vmem %s4617_s12, %s4126_s21  ;;  %v661_v48 = vrot.slane %v4639_v40, 4  ;;  %s5351_s11 = scalar_lea.vmem %s5343_s8, %s4126_s21 }
  0x51   : > { %v4643_v42 = vld [vmem:[%s4631_s13 + $0x80] sm:$0xff]  ;;  %v4646_v43 = vld [vmem:[%s4631_s13 + $0x90] sm:$0xff]  ;;  %v636_v55 = vsel %vm635_vm0, %v634_v41, %v4623_v36  ;;  %s5919_s20 = sld [smem:[#allocation2]]  ;;  %s5988_s21 = scalar_lea.vmem [#allocation4], %s4609_s22 }
  0x52   : > { %v4649_v44 = vld [vmem:[%s4631_s13 + $0xa0] sm:$0xff]  ;;  %v4657_v49 = vld [vmem:[%s4631_s13 + $0xb0] sm:$0xff]  ;;  %v973_v53 = vrot.slane %v4643_v42, 4  ;;  %v985_v54 = vrot.slane %v4646_v43, 4  ;;  %v4683_v62 = vperm.slane %v636_v55, %v4633_v38  ;;  %s5998_s7 = scalar_lea.vmem [#allocation5], %s4609_s22  ;;  %s4240_s22 = sshll.u32 (%p4538_p6), %s4432_s26, 5 }
  0x53   : > { %v4660_v50 = vld [vmem:[%s4631_s13 + $0xc0] sm:$0xff]  ;;  %v4663_v51 = vld [vmem:[%s4631_s13 + $0xd0] sm:$0xff]  ;;  %v971_v52 = vrot.slane %v4649_v44, 4  ;;  %v983_v58 = vrot.slane %v4657_v49, 4 }
  0x54   : > { %v4671_v56 = vld [vmem:[%s4631_s13 + $0xe0] sm:$0xff]  ;;  %v4674_v57 = vld [vmem:[%s4631_s13 + $0xf0] sm:$0xff]  ;;  %v997_v59 = vrot.slane %v4660_v50, 4  ;;  %v1009_v60 = vrot.slane %v4663_v51, 4 }
  0x55   : > { %v4680_v61 = vld [vmem:[%s4631_s13] sm:$0xff]  ;;  %v972_v63 = vsel %vm635_vm0, %v971_v52, %v4643_v42  ;;  %v995_v0 = vrot.slane %v4671_v56, 4  ;;  %v1007_v1 = vrot.slane %v4674_v57, 4  ;;  %v4693_v3 = vld [vmem:[%s4631_s13 + $0x30] sm:$0xff]  ;;  %v984_v6 = vsel %vm635_vm0, %v983_v58, %v4646_v43 }
  0x56   : > { %v4690_v2 = vld [vmem:[%s4631_s13 + $0x20] sm:$0xff]  ;;  %v861_v4 = vrot.slane %v4680_v61, 4  ;;  %v978_v5 = vperm.slane %v972_v63, %v4633_v38  ;;  %v4700_v7 = vld [vmem:[%s4631_s13 + $0x10] sm:$0xff]  ;;  %v871_v11 = vrot.slane %v4693_v3, 4  ;;  %v990_v12 = vperm.slane %v984_v6, %v4633_v38 }
  0x57   : > { %v4703_v8 = vld [vmem:[%s4631_s13 + $0x40] sm:$0xff]  ;;  %v859_v10 = vrot.slane %v4690_v2, 4  ;;  %v996_v13 = vsel %vm635_vm0, %v995_v0, %v4660_v50  ;;  %v1008_v14 = vsel %vm635_vm0, %v1007_v1, %v4663_v51  ;;  %v4721_v21 = vld [vmem:[%s4631_s13 + $0x70] sm:$0xff]  ;;  %v4744_v1 = vld [vmem:[%s4620_s23 + $0x8] sm:$0xff] }
  0x58   : > { %v4706_v9 = vld [vmem:[%s4631_s13 + $0x60] sm:$0xff]  ;;  %v1002_v16 = vperm.slane %v996_v13, %v4633_v38  ;;  %v1014_v17 = vperm.slane %v1008_v14, %v4633_v38  ;;  %v1021_v18 = vrot.slane %v978_v5, 4  ;;  %v1019_v20 = vrot.slane %v990_v12, 4  ;;  %v4733_v31 = vld [vmem:[%s4631_s13 + $0x50] sm:$0xff] }
  0x59   : > { %v883_v15 = vrot.slane %v4706_v9, 4  ;;  %v860_v19 = vsel %vm635_vm0, %v859_v10, %v4680_v61  ;;  %v872_v23 = vsel %vm635_vm0, %v871_v11, %v4700_v7  ;;  %v885_v32 = vrot.slane %v4703_v8, 4 }
  0x5a   : > { %v866_v22 = vperm.slane %v860_v19, %v4633_v38  ;;  %v1043_v25 = vrot.slane %v1014_v17, 4  ;;  %v1022_v26 = vsel %vm635_vm0, %v990_v12, %v1021_v18  ;;  %v1045_v27 = vrot.slane %v1002_v16, 4 }
  0x5b   : > { %v884_v24 = vsel %vm635_vm0, %v883_v15, %v4703_v8  ;;  %v878_v28 = vperm.slane %v872_v23, %v4633_v38  ;;  %v1020_v29 = vsel %vm635_vm0, %v1019_v20, %v978_v5  ;;  %v1030_v30 = vperm.slane %v1022_v26, %v4651_v45  ;;  %v4758_v20 = vld [vmem:[%s4620_s23 + $0x38] sm:$0xff] }
  0x5c   : > { %v890_v33 = vperm.slane %v884_v24, %v4633_v38  ;;  %v1026_v34 = vperm.slane %v1020_v29, %v4651_v45  ;;  %v1044_v35 = vsel %vm635_vm0, %v1043_v25, %v1002_v16  ;;  %v1046_v41 = vsel %vm635_vm0, %v1014_v17, %v1045_v27  ;;  %v4751_v16 = vld [vmem:[%s4620_s23 + $0x30] sm:$0xff]  ;;  %v4773_v29 = vld [vmem:[%s4620_s23 + $0x28] sm:$0xff] }
  0x5d   : > { %v895_v52 = vrot.slane %v4721_v21, 4  ;;  %v1050_v55 = vperm.slane %v1044_v35, %v4651_v45  ;;  %v1054_v58 = vperm.slane %v1046_v41, %v4651_v45  ;;  %v1073_v63 = vrot.slane %v1030_v30, 4 }
  0x5e   : > { %v907_v0 = vrot.slane %v878_v28, 4  ;;  %v1069_v5 = vrot.slane %v1026_v34, 4  ;;  %v909_v10 = vrot.slane %v866_v22, 4  ;;  %v933_v11 = vrot.slane %v890_v33, 4 }
  0x5f   : > { %v896_v6 = vsel %vm635_vm0, %v895_v52, %v4733_v31  ;;  %v1067_v12 = vrot.slane %v1050_v55, 4  ;;  %v1071_v13 = vrot.slane %v1054_v58, 4  ;;  %v1074_v14 = vsel %vm635_vm0, %v1054_v58, %v1073_v63 }
  0x60   : > { %v902_v15 = vperm.slane %v896_v6, %v4633_v38  ;;  %v1070_v17 = vsel %vm635_vm0, %v1050_v55, %v1069_v5  ;;  %4139 = vmatpush.xpose.msk.msra.mxu3 %vm1309_vm1, %v1074_v14  ;;  %v908_v18 = vsel %vm635_vm0, %v907_v0, %v866_v22  ;;  %v910_v19 = vsel %vm635_vm0, %v878_v28, %v909_v10 }
  0x61   : > { %v648_v23 = vsel %vm635_vm0, %v647_v47, %v4744_v1  ;;  %v1068_v24 = vsel %vm635_vm0, %v1067_v12, %v1026_v34  ;;  %4131 = vmatpush.xpose.msk.msra.mxu1 %vm1309_vm1, %v1070_v17  ;;  %v1072_v25 = vsel %vm635_vm0, %v1071_v13, %v1030_v30  ;;  %v914_v26 = vperm.slane %v908_v18, %v4651_v45 }
  0x62   : > { %v931_v27 = vrot.slane %v902_v15, 4  ;;  %4127 = vmatpush.xpose.msk.msra.mxu0 %vm1309_vm1, %v1068_v24  ;;  %4135 = vmatpush.xpose.msk.msra.mxu2 %vm1309_vm1, %v1072_v25  ;;  %v918_v22 = vperm.slane %v910_v19, %v4651_v45  ;;  %v934_v28 = vsel %vm635_vm0, %v902_v15, %v933_v11  ;;  %v654_v47 = vperm.slane %v648_v23, %v4633_v38 }
  0x63   : > { %v659_v34 = vrot.slane %v4751_v16, 4  ;;  %v957_v30 = vrot.slane %v914_v26, 4  ;;  %v942_v41 = vperm.slane %v934_v28, %v4651_v45  ;;  %v671_v52 = vrot.slane %v4758_v20, 4 }
  0x64   : > { %v932_v35 = vsel %vm635_vm0, %v931_v27, %v890_v33  ;;  %v961_v58 = vrot.slane %v918_v22, 4  ;;  %v683_v0 = vrot.slane %v654_v47, 4  ;;  %v685_v33 = vrot.slane %v4683_v62, 4 }
  0x65   : > { %v938_v55 = vperm.slane %v932_v35, %v4651_v45  ;;  %v660_v63 = vsel %vm635_vm0, %v659_v34, %v4639_v40  ;;  %v959_v5 = vrot.slane %v942_v41, 4  ;;  %v672_v10 = vsel %vm635_vm0, %v671_v52, %v4773_v29 }
  0x66   : > { %v666_v6 = vperm.slane %v660_v63, %v4633_v38  ;;  %v962_v13 = vsel %vm635_vm0, %v942_v41, %v961_v58  ;;  %v678_v14 = vperm.slane %v672_v10, %v4633_v38  ;;  %v684_v17 = vsel %vm635_vm0, %v683_v0, %v4683_v62  ;;  %v4836_v0 = vld [vmem:[%s4620_s23 + $0x58] sm:$0xff] }
  0x67   : > { %v955_v11 = vrot.slane %v938_v55, 4  ;;  %v958_v12 = vsel %vm635_vm0, %v938_v55, %v957_v30  ;;  %v960_v15 = vsel %vm635_vm0, %v959_v5, %v918_v22  ;;  %4140 = vmatpush.xpose.msk.msra.mxu3 %vm1309_vm1, %v962_v13  ;;  %v686_v18 = vsel %vm635_vm0, %v654_v47, %v685_v33  ;;  %v4815_v47 = vld [vmem:[%s4620_s23 + $0x50] sm:$0xff]  ;;  %v4852_v13 = vld [vmem:[%s4620_s23 + $0x78] sm:$0xff] }
  0x68   : > { %4132 = vmatpush.xpose.msk.msra.mxu1 %vm1309_vm1, %v958_v12  ;;  %v709_v19 = vrot.slane %v666_v6, 4  ;;  %4136 = vmatpush.xpose.msk.msra.mxu2 %vm1309_vm1, %v960_v15  ;;  %v690_v24 = vperm.slane %v684_v17, %v4651_v45  ;;  %v707_v25 = vrot.slane %v678_v14, 4  ;;  %v694_v27 = vperm.slane %v686_v18, %v4651_v45  ;;  %v4841_v5 = vld [vmem:[%s4620_s23 + $0x70] sm:$0xff]  ;;  %v4849_v12 = vld [vmem:[%s4620_s23 + $0x48] sm:$0xff] }
  0x69   : > { %v956_v23 = vsel %vm635_vm0, %v955_v11, %v914_v26  ;;  %v974_v62 = vsel %vm635_vm0, %v4649_v44, %v973_v53  ;;  %v986_v26 = vsel %vm635_vm0, %v4657_v49, %v985_v54  ;;  %v998_v28 = vsel %vm635_vm0, %v4671_v56, %v997_v59  ;;  %v4824_v53 = vld [vmem:[%s4620_s23 + $0x40] sm:$0xff] }
  0x6a   : > { %4128 = vmatpush.xpose.msk.msra.mxu0 %vm1309_vm1, %v956_v23  ;;  %v710_v22 = vsel %vm635_vm0, %v678_v14, %v709_v19  ;;  %v708_v34 = vsel %vm635_vm0, %v707_v25, %v666_v6  ;;  %v733_v35 = vrot.slane %v690_v24, 4  ;;  %v737_v30 = vrot.slane %v694_v27, 4  ;;  %v4860_v19 = vld [vmem:[%s4620_s23 + $0x60] sm:$0xff] }
  0x6b   : > { %v718_v42 = vperm.slane %v710_v22, %v4651_v45  ;;  %v714_v44 = vperm.slane %v708_v34, %v4651_v45  ;;  %v982_v43 = vperm.slane %v974_v62, %v4633_v38  ;;  %v994_v49 = vperm.slane %v986_v26, %v4633_v38  ;;  %v4869_v22 = vld [vmem:[%s4620_s23 + $0x68] sm:$0xff] }
  0x6c   : > { %v1006_v50 = vperm.slane %v998_v28, %v4633_v38  ;;  %v1010_v59 = vsel %vm635_vm0, %v4674_v57, %v1009_v60  ;;  %v747_v41 = vrot.slane %v4815_v47, 4  ;;  %v759_v23 = vrot.slane %v4836_v0, 4 }
  0x6d   : > { %v735_v54 = vrot.slane %v718_v42, 4  ;;  %v738_v56 = vsel %vm635_vm0, %v718_v42, %v737_v30  ;;  %v731_v52 = vrot.slane %v714_v44, 4  ;;  %v734_v55 = vsel %vm635_vm0, %v714_v44, %v733_v35 }
  0x6e   : > { %4141 = vmatmul.msk.f32.vlgmr.msra.gmra.mxu3 %vm1309_vm1, %v738_v56  ;;  %v1018_v58 = vperm.slane %v1010_v59, %v4633_v38  ;;  %v1033_v63 = vrot.slane %v982_v43, 4  ;;  %4133 = vmatmul.msk.f32.vlgmr.msra.gmra.mxu1 %vm1309_vm1, %v734_v55  ;;  %v1057_v57 = vrot.slane %v1006_v50, 4  ;;  %v1031_v60 = vrot.slane %v994_v49, 4 }
  0x6f   : > { %v736_v51 = vsel %vm635_vm0, %v735_v54, %v694_v27  ;;  %v748_v6 = vsel %vm635_vm0, %v747_v41, %v4824_v53  ;;  %v732_v10 = vsel %vm635_vm0, %v731_v52, %v690_v24  ;;  %v771_v62 = vrot.slane %v4841_v5, 4 }
  0x70   : > { %4137 = vmatmul.msk.f32.vlgmr.msra.gmra.mxu2 %vm1309_vm1, %v736_v51  ;;  %v1034_v33 = vsel %vm635_vm0, %v994_v49, %v1033_v63  ;;  %v1055_v11 = vrot.slane %v1018_v58, 4  ;;  %v754_v14 = vperm.slane %v748_v6, %v4633_v38  ;;  %4129 = vmatmul.msk.f32.vlgmr.msra.gmra.mxu0 %vm1309_vm1, %v732_v10  ;;  %v1058_v17 = vsel %vm635_vm0, %v1018_v58, %v1057_v57 }
  0x71   : > { %v1042_v15 = vperm.slane %v1034_v33, %v4651_v45  ;;  %v1032_v18 = vsel %vm635_vm0, %v1031_v60, %v982_v43  ;;  %v1066_v24 = vperm.slane %v1058_v17, %v4651_v45  ;;  %v760_v28 = vsel %vm635_vm0, %v759_v23, %v4849_v12 }
  0x72   : > { %v4865_v25 = vperm.slane %v1032_v18, %v4651_v45  ;;  %v1056_v27 = vsel %vm635_vm0, %v1055_v11, %v1006_v50  ;;  %v773_v34 = vrot.slane %v4860_v19, 4  ;;  %v783_v35 = vrot.slane %v4852_v13, 4 }
  0x73   : > { %v1062_v26 = vperm.slane %v1056_v27, %v4651_v45  ;;  %v1079_v42 = vrot.slane %v1066_v24, 4  ;;  %v766_v30 = vperm.slane %v760_v28, %v4633_v38  ;;  %v772_v44 = vsel %vm635_vm0, %v771_v62, %v4860_v19 }
  0x74   : > { %v797_v43 = vrot.slane %v754_v14, 4  ;;  %v778_v50 = vperm.slane %v772_v44, %v4633_v38  ;;  %v784_v54 = vsel %vm635_vm0, %v783_v35, %v4869_v22  ;;  %v1081_v56 = vrot.slane %v1042_v15, 4 }
  0x75   : > { %v1075_v49 = vrot.slane %v1062_v26, 4  ;;  %v1080_v59 = vsel %vm635_vm0, %v1079_v42, %v1042_v15  ;;  %v790_v41 = vperm.slane %v784_v54, %v4633_v38  ;;  %v795_v52 = vrot.slane %v766_v30, 4 }
  0x76   : > { %v798_v55 = vsel %vm635_vm0, %v766_v30, %v797_v43  ;;  %4151 = vmatpush.xpose.msk.msrb.mxu2 %vm1309_vm1, %v1080_v59  ;;  %v821_v51 = vrot.slane %v778_v50, 4  ;;  %v1082_v57 = vsel %vm635_vm0, %v1066_v24, %v1081_v56  ;;  %v862_v10 = vsel %vm635_vm0, %v4690_v2, %v861_v4 }
  0x77   : > { %v1076_v58 = vsel %vm635_vm0, %v1075_v49, %v4865_v25  ;;  %v806_v63 = vperm.slane %v798_v55, %v4651_v45  ;;  %v796_v60 = vsel %vm635_vm0, %v795_v52, %v754_v14  ;;  %v819_v6 = vrot.slane %v790_v41, 4  ;;  %4155 = vmatpush.xpose.msk.msrb.mxu3 %vm1309_vm1, %v1082_v57 }
  0x78   : > { %4143 = vmatpush.xpose.msk.msrb.mxu0 %vm1309_vm1, %v1076_v58  ;;  %v873_v33 = vrot.slane %v4700_v7, 4  ;;  %v802_v11 = vperm.slane %v796_v60, %v4651_v45  ;;  %v822_v15 = vsel %vm635_vm0, %v790_v41, %v821_v51  ;;  %v870_v18 = vperm.slane %v862_v10, %v4633_v38 }
  0x79   : > { %v849_v17 = vrot.slane %v806_v63, 4  ;;  %v820_v23 = vsel %vm635_vm0, %v819_v6, %v778_v50  ;;  %v830_v14 = vperm.slane %v822_v15, %v4651_v45  ;;  %v886_v61 = vsel %vm635_vm0, %v4706_v9, %v885_v32 }
  0x7a   : > { %v874_v24 = vsel %vm635_vm0, %v4693_v3, %v873_v33  ;;  %v826_v2 = vperm.slane %v820_v23, %v4651_v45  ;;  %v845_v4 = vrot.slane %v802_v11, 4  ;;  %v894_v27 = vperm.slane %v886_v61, %v4633_v38 }
  0x7b   : > { %v882_v7 = vperm.slane %v874_v24, %v4633_v38  ;;  %v847_v62 = vrot.slane %v830_v14, 4  ;;  %v850_v28 = vsel %vm635_vm0, %v830_v14, %v849_v17  ;;  %v897_v35 = vrot.slane %v4733_v31, 4 }
  0x7c   : > { %v921_v42 = vrot.slane %v870_v18, 4  ;;  %v846_v3 = vsel %vm635_vm0, %v826_v2, %v845_v4  ;;  %4142 = vmatmul.msk.f32.gmra.mxu3 %vm1309_vm1, %v850_v28  ;;  %v945_v8 = vrot.slane %v894_v27, 4  ;;  %v843_v30 = vrot.slane %v826_v2, 4  ;;  %v541_v2 = vld [vmem:[%s4617_s12 + $0x28] sm:$0xff]  ;;  %v539_v28 = vld [vmem:[%s4617_s12 + $0x18] sm:$0xff] }
  0x7d   : > { %v919_v9 = vrot.slane %v882_v7, 4  ;;  %4134 = vmatmul.msk.f32.gmra.mxu1 %vm1309_vm1, %v846_v3  ;;  %v848_v32 = vsel %vm635_vm0, %v847_v62, %v806_v63  ;;  %v898_v44 = vsel %vm635_vm0, %v4721_v21, %v897_v35  ;;  %v1077_v49 = vrot.slane %v4865_v25, 4 }
  0x7e   : > { %v922_v43 = vsel %vm635_vm0, %v882_v7, %v921_v42  ;;  %4138 = vmatmul.msk.f32.gmra.mxu2 %vm1309_vm1, %v848_v32  ;;  %v906_v31 = vperm.slane %v898_v44, %v4633_v38  ;;  %v844_v54 = vsel %vm635_vm0, %v843_v30, %v802_v11  ;;  %v638_v25 = vsel %vm635_vm0, %v4626_v37, %v637_v46  ;;  %v543_v11 = vld [vmem:[%s4617_s12 + $0x38] sm:$0xff]  ;;  %v537_v30 = vld [vmem:[%s4617_s12 + $0x8] sm:$0xff] }
  0x7f   : > { %v930_v50 = vperm.slane %v922_v43, %v4651_v45  ;;  %v920_v56 = vsel %vm635_vm0, %v919_v9, %v870_v18  ;;  %4130 = vmatmul.msk.f32.gmra.mxu0 %vm1309_vm1, %v844_v54  ;;  %v1078_v21 = vsel %vm635_vm0, %v1062_v26, %v1077_v49  ;;  %v649_v41 = vrot.slane %v4744_v1, 4  ;;  %v542_v9 = vld [vmem:[%s4617_s12 + $0x30] sm:$0xff] }
  0x80   : > { %v926_v59 = vperm.slane %v920_v56, %v4651_v45  ;;  %v946_v52 = vsel %vm635_vm0, %v906_v31, %v945_v8  ;;  %v943_v55 = vrot.slane %v906_v31, 4  ;;  %4147 = vmatpush.xpose.msk.msrb.mxu1 %vm1309_vm1, %v1078_v21  ;;  %v646_v63 = vperm.slane %v638_v25, %v4633_v38  ;;  %v551_v21 = vld [vmem:[%s4617_s12 + $0x78] sm:$0xff] }
  0x81   : > { %v969_v58 = vrot.slane %v930_v50, 4  ;;  %v954_v51 = vperm.slane %v946_v52, %v4651_v45  ;;  %v650_v26 = vsel %vm635_vm0, %v4636_v39, %v649_v41  ;;  %v662_v46 = vsel %vm635_vm0, %v4751_v16, %v661_v48 }
  0x82   : > { %v673_v57 = vrot.slane %v4773_v29, 4  ;;  %v944_v60 = vsel %vm635_vm0, %v943_v55, %v894_v27  ;;  %v658_v6 = vperm.slane %v650_v26, %v4633_v38  ;;  %v670_v10 = vperm.slane %v662_v46, %v4633_v38 }
  0x83   : > { %v697_v33 = vrot.slane %v646_v63, 4  ;;  %v967_v15 = vrot.slane %v954_v51, 4  ;;  %v950_v17 = vperm.slane %v944_v60, %v4651_v45  ;;  %v970_v18 = vsel %vm635_vm0, %v954_v51, %v969_v58  ;;  %v538_v58 = vld [vmem:[%s4617_s12 + $0x10] sm:$0xff] }
  0x84   : > { %v674_v48 = vsel %vm635_vm0, %v4758_v20, %v673_v57  ;;  %4156 = vmatpush.xpose.msk.msrb.mxu3 %vm1309_vm1, %v970_v18  ;;  %v721_v24 = vrot.slane %v670_v10, 4  ;;  %v965_v61 = vrot.slane %v926_v59, 4  ;;  %v695_v62 = vrot.slane %v658_v6, 4  ;;  %v536_v57 = vld [vmem:[%s4617_s12] sm:$0xff]  ;;  %v545_v18 = vld [vmem:[%s4617_s12 + $0x48] sm:$0xff] }
  0x85   : > { %v682_v23 = vperm.slane %v674_v48, %v4633_v38  ;;  %v698_v14 = vsel %vm635_vm0, %v658_v6, %v697_v33  ;;  %v968_v4 = vsel %vm635_vm0, %v967_v15, %v930_v50  ;;  %v963_v7 = vrot.slane %v950_v17, 4  ;;  %v549_v48 = vld [vmem:[%s4617_s12 + $0x68] sm:$0xff] }
  0x86   : > { %v706_v27 = vperm.slane %v698_v14, %v4651_v45  ;;  %4152 = vmatpush.xpose.msk.msrb.mxu2 %vm1309_vm1, %v968_v4  ;;  %v966_v42 = vsel %vm635_vm0, %v950_v17, %v965_v61  ;;  %v749_v8 = vrot.slane %v4824_v53, 4  ;;  %v696_v43 = vsel %vm635_vm0, %v695_v62, %v646_v63 }
  0x87   : > { %v722_v35 = vsel %vm635_vm0, %v682_v23, %v721_v24  ;;  %v719_v3 = vrot.slane %v682_v23, 4  ;;  %v964_v32 = vsel %vm635_vm0, %v963_v7, %v926_v59  ;;  %4148 = vmatpush.xpose.msk.msrb.mxu1 %vm1309_vm1, %v966_v42  ;;  %v702_v31 = vperm.slane %v696_v43, %v4651_v45  ;;  %v540_v59 = vld [vmem:[%s4617_s12 + $0x20] sm:$0xff] }
  0x88   : > { %4168 = vmatpush.xpose.msk.msra.mxu3 %vm1309_vm1, %v543_v11  ;;  %v730_v44 = vperm.slane %v722_v35, %v4651_v45  ;;  %v745_v49 = vrot.slane %v706_v27, 4  ;;  %4144 = vmatpush.xpose.msk.msrb.mxu0 %vm1309_vm1, %v964_v32  ;;  %v750_v54 = vsel %vm635_vm0, %v4815_v47, %v749_v8  ;;  %v761_v56 = vrot.slane %v4849_v12, 4  ;;  %v547_v11 = vld [vmem:[%s4617_s12 + $0x58] sm:$0xff]  ;;  %v546_v35 = vld [vmem:[%s4617_s12 + $0x50] sm:$0xff]  ;;  %v544_v8 = vld [vmem:[%s4617_s12 + $0x40] sm:$0xff] }
  0x89   : > { %v720_v50 = vsel %vm635_vm0, %v719_v3, %v670_v10  ;;  %v758_v55 = vperm.slane %v750_v54, %v4633_v38  ;;  %v741_v63 = vrot.slane %v702_v31, 4  ;;  %v774_v26 = vsel %vm635_vm0, %v4841_v5, %v773_v34 }
  0x8a   : > { %4165 = vmatpush.xpose.msk.msra.mxu2 %vm1309_vm1, %v541_v2  ;;  %v743_v25 = vrot.slane %v730_v44, 4  ;;  %v726_v41 = vperm.slane %v720_v50, %v4651_v45  ;;  %v746_v52 = vsel %vm635_vm0, %v730_v44, %v745_v49  ;;  %v762_v51 = vsel %vm635_vm0, %v4836_v0, %v761_v56  ;;  %v550_v2 = vld [vmem:[%s4617_s12 + $0x70] sm:$0xff] }
  0x8b   : > { %4162 = vmatpush.xpose.msk.msra.mxu1 %vm1309_vm1, %v539_v28  ;;  %4157 = vmatmul.msk.f32.vlgmr.msrb.gmra.mxu3 %vm1309_vm1, %v746_v52  ;;  %v785_v46 = vrot.slane %v4869_v22, 4  ;;  %v770_v10 = vperm.slane %v762_v51, %v4633_v38  ;;  %v782_v33 = vperm.slane %v774_v26, %v4633_v38  ;;  %v809_v17 = vrot.slane %v758_v55, 4  ;;  %v553_v52 = vld [vmem:[%s4617_s12 + $0x88] sm:$0xff]  ;;  %v562_v26 = vld [vmem:[%s4617_s12 + $0xd0] sm:$0xff] }
  0x8c   : > { %4159 = vmatpush.xpose.msk.msra.mxu0 %vm1309_vm1, %v537_v30  ;;  %4169 = vmatpush.xpose.msk.msra.mxu3 %vm1309_vm1, %v542_v9  ;;  %v744_v60 = vsel %vm635_vm0, %v743_v25, %v706_v27  ;;  %v739_v6 = vrot.slane %v726_v41, 4  ;;  %v742_v34 = vsel %vm635_vm0, %v726_v41, %v741_v63  ;;  %v548_v30 = vld [vmem:[%s4617_s12 + $0x60] sm:$0xff]  ;;  %v557_v25 = vld [vmem:[%s4617_s12 + $0xa8] sm:$0xff]  ;;  %v559_v41 = vld [vmem:[%s4617_s12 + $0xb8] sm:$0xff] }
  0x8d   : > { %4153 = vmatmul.msk.f32.vlgmr.msrb.gmra.mxu2 %vm1309_vm1, %v744_v60  ;;  %v786_v15 = vsel %vm635_vm0, %v4852_v13, %v785_v46  ;;  %4149 = vmatmul.msk.f32.vlgmr.msrb.gmra.mxu1 %vm1309_vm1, %v742_v34  ;;  %v833_v24 = vrot.slane %v782_v33, 4  ;;  %v807_v61 = vrot.slane %v770_v10, 4  ;;  %v810_v4 = vsel %vm635_vm0, %v770_v10, %v809_v17  ;;  %v565_v63 = vld [vmem:[%s4617_s12 + $0xe8] sm:$0xff]  ;;  %v564_v46 = vld [vmem:[%s4617_s12 + $0xe0] sm:$0xff] }
  0x8e   : > { %4166 = vmatpush.xpose.msk.msra.mxu2 %vm1309_vm1, %v540_v59  ;;  %v740_v23 = vsel %vm635_vm0, %v739_v6, %v702_v31  ;;  %v794_v14 = vperm.slane %v786_v15, %v4633_v38  ;;  %v818_v7 = vperm.slane %v810_v4, %v4651_v45  ;;  %v561_v51 = vld [vmem:[%s4617_s12 + $0xc8] sm:$0xff] }
  0x8f   : > { %4163 = vmatpush.xpose.msk.msra.mxu1 %vm1309_vm1, %v538_v58  ;;  %4145 = vmatmul.msk.f32.vlgmr.msrb.gmra.mxu0 %vm1309_vm1, %v740_v23  ;;  %v808_v62 = vsel %vm635_vm0, %v807_v61, %v758_v55  ;;  %v556_v55 = vld [vmem:[%s4617_s12 + $0xa0] sm:$0xff]  ;;  %v1308_v10 = vld [vmem:[%s6122_s4 + $0x8] sm:$0xff] }
  0x90   : > { %4180 = vmatpush.xpose.msk.msrb.mxu3 %vm1309_vm1, %v551_v21  ;;  %4160 = vmatpush.xpose.msk.msra.mxu0 %vm1309_vm1, %v536_v57  ;;  %v834_v27 = vsel %vm635_vm0, %v794_v14, %v833_v24  ;;  %v831_v28 = vrot.slane %v794_v14, 4  ;;  %v814_v3 = vperm.slane %v808_v62, %v4651_v45  ;;  %v857_v32 = vrot.slane %v818_v7, 4  ;;  %v555_v21 = vld [vmem:[%s4617_s12 + $0x98] sm:$0xff]  ;;  %v552_v58 = vld [vmem:[%s4617_s12 + $0x80] sm:$0xff] }
  0x91   : > { %v842_v42 = vperm.slane %v834_v27, %v4651_v45  ;;  %v560_v57 = vld [vmem:[%s4617_s12 + $0xc0] sm:$0xff] }
  0x92   : > { %4177 = vmatpush.xpose.msk.msrb.mxu2 %vm1309_vm1, %v549_v48  ;;  %v832_v9 = vsel %vm635_vm0, %v831_v28, %v782_v33  ;;  %v853_v49 = vrot.slane %v814_v3, 4 }
  0x93   : > { %4174 = vmatpush.xpose.msk.msrb.mxu1 %vm1309_vm1, %v547_v11  ;;  %v855_v44 = vrot.slane %v842_v42, 4  ;;  %v838_v43 = vperm.slane %v832_v9, %v4651_v45  ;;  %v858_v31 = vsel %vm635_vm0, %v842_v42, %v857_v32 }
  0x94   : > { %4171 = vmatpush.xpose.msk.msrb.mxu0 %vm1309_vm1, %v545_v18  ;;  %4181 = vmatpush.xpose.msk.msrb.mxu3 %vm1309_vm1, %v550_v2 }
  0x95   : > { %v856_v50 = vsel %vm635_vm0, %v855_v44, %v818_v7  ;;  %v851_v54 = vrot.slane %v838_v43, 4  ;;  %4158 = vmatmul.msk.f32.gmra.mxu3 %vm1309_vm1, %v858_v31  ;;  %v854_v56 = vsel %vm635_vm0, %v838_v43, %v853_v49 }
  0x96   : > { %4178 = vmatpush.xpose.msk.msrb.mxu2 %vm1309_vm1, %v548_v30  ;;  %4150 = vmatmul.msk.f32.gmra.mxu1 %vm1309_vm1, %v854_v56 }
  0x97   : > { %4175 = vmatpush.xpose.msk.msrb.mxu1 %vm1309_vm1, %v546_v35  ;;  %4154 = vmatmul.msk.f32.gmra.mxu2 %vm1309_vm1, %v856_v50  ;;  %v852_v59 = vsel %vm635_vm0, %v851_v54, %v814_v3 }
  0x98   : > { %4172 = vmatpush.xpose.msk.msrb.mxu0 %vm1309_vm1, %v544_v8 }
  0x99   : > { %4146 = vmatmul.msk.f32.gmra.mxu0 %vm1309_vm1, %v852_v59 }
  0x9d   : > { %4170 = vmatmul.msk.f32.vlgmr.msra.gmra.mxu3 %vm1309_vm1, %v4636_v39  ;;  %v554_v39 = vld [vmem:[%s4617_s12 + $0x90] sm:$0xff] }
  0x9e   : > { %4164 = vmatmul.msk.f32.vlgmr.msra.gmra.mxu1 %vm1309_vm1, %v4744_v1  ;;  %4192 = vmatpush.xpose.msk.msra.mxu3 %vm1309_vm1, %v559_v41  ;;  %v558_v1 = vld [vmem:[%s4617_s12 + $0xb0] sm:$0xff] }
  0x9f   : > { %4167 = vmatmul.msk.f32.vlgmr.msra.gmra.mxu2 %vm1309_vm1, %v4626_v37  ;;  %4186 = vmatpush.xpose.msk.msra.mxu1 %vm1309_vm1, %v555_v21  ;;  %v567_v37 = vld [vmem:[%s4617_s12 + $0xf8] sm:$0xff] }
  0xa0   : > { %4189 = vmatpush.xpose.msk.msra.mxu2 %vm1309_vm1, %v557_v25 }
  0xa1   : > { %4161 = vmatmul.msk.f32.vlgmr.msra.gmra.mxu0 %vm1309_vm1, %v4623_v36  ;;  %v563_v36 = vld [vmem:[%s4617_s12 + $0xd8] sm:$0xff] }
  0xa2   : > { %4183 = vmatpush.xpose.msk.msra.mxu0 %vm1309_vm1, %v553_v52  ;;  %4193 = vmatpush.xpose.msk.msra.mxu3 %vm1309_vm1, %v558_v1 }
  0xa3   : > { %4187 = vmatpush.xpose.msk.msra.mxu1 %vm1309_vm1, %v554_v39 }
  0xa4   : > { %4190 = vmatpush.xpose.msk.msra.mxu2 %vm1309_vm1, %v556_v55 }
  0xa5   : > { %4182 = vmatmul.msk.f32.vlgmr.msrb.gmra.mxu3 %vm1309_vm1, %v4758_v20  ;;  %v566_v20 = vld [vmem:[%s4617_s12 + $0xf0] sm:$0xff]  ;;  %s3892_s12 = sadd.s32 (%p4538_p6), %s4428_s25, %s4240_s22 }
  0xa6   : > { %4184 = vmatpush.xpose.msk.msra.mxu0 %vm1309_vm1, %v552_v58  ;;  %4176 = vmatmul.msk.f32.vlgmr.msrb.gmra.mxu1 %vm1309_vm1, %v4773_v29  ;;  %s4241_s23 = sshll.u32 (%p4538_p6), %s3892_s12, 3 }
  0xa7   : > { %4179 = vmatmul.msk.f32.vlgmr.msrb.gmra.mxu2 %vm1309_vm1, %v4751_v16  ;;  %4204 = vmatpush.xpose.msk.msrb.mxu3 %vm1309_vm1, %v567_v37  ;;  %s3894_s10 = scalar_lea.vmem (%p4538_p6), %s6124_s6, %s4241_s23 }
  0xa8   : > { %4198 = vmatpush.xpose.msk.msrb.mxu1 %vm1309_vm1, %v563_v36  ;;  %4201 = vmatpush.xpose.msk.msrb.mxu2 %vm1309_vm1, %v565_v63 }
  0xa9   : > { %4173 = vmatmul.msk.f32.vlgmr.msrb.gmra.mxu0 %vm1309_vm1, %v4639_v40  ;;  %v1307_v40 = vld [vmem:[%s6122_s4] sm:$0xff] }
  0xaa   : > { %4195 = vmatpush.xpose.msk.msrb.mxu0 %vm1309_vm1, %v561_v51 }
  0xab   : > { %4205 = vmatpush.xpose.msk.msrb.mxu3 %vm1309_vm1, %v566_v20 }
  0xac   : > { %4199 = vmatpush.xpose.msk.msrb.mxu1 %vm1309_vm1, %v562_v26  ;;  %4202 = vmatpush.xpose.msk.msrb.mxu2 %vm1309_vm1, %v564_v46 }
  0xad   : > { %4194 = vmatmul.msk.f32.vlgmr.msra.gmra.mxu3 %vm1309_vm1, %v4836_v0 }
  0xae   : > { %4196 = vmatpush.xpose.msk.msrb.mxu0 %vm1309_vm1, %v560_v57  ;;  %4188 = vmatmul.msk.f32.vlgmr.msra.gmra.mxu1 %vm1309_vm1, %v4849_v12 }
  0xaf   : > { %4191 = vmatmul.msk.f32.vlgmr.msra.gmra.mxu2 %vm1309_vm1, %v4815_v47 }
  0xb1   : > { %4185 = vmatmul.msk.f32.vlgmr.msra.gmra.mxu0 %vm1309_vm1, %v4824_v53 }
  0xb5   : > { %4206 = vmatmul.msk.f32.vlgmr.msrb.gmra.mxu3 %vm1309_vm1, %v4852_v13 }
  0xb6   : > { %4200 = vmatmul.msk.f32.vlgmr.msrb.gmra.mxu1 %vm1309_vm1, %v4869_v22 }
  0xb7   : > { %4203 = vmatmul.msk.f32.vlgmr.msrb.gmra.mxu2 %vm1309_vm1, %v4841_v5 }
  0xb9   : > { %4197 = vmatmul.msk.f32.vlgmr.msrb.gmra.mxu0 %vm1309_vm1, %v4860_v19 }
  0xeb   : > { %v1374_v16 = vpop.f32.mrf.mxu1 }
  0xec   : > { %v5110_v29 = vadd.f32 %v1374_v16, %v1307_v40 }
  0xed   : > { %v1339_v47 = vpop.f32.mrf.mxu0 }
  0xee   : > { %v5112_v53 = vadd.f32 %v1339_v47, %v1307_v40  ;;  %v2061_v0 = vsel %vm2054_vm2, %v5110_v29, -inf }
  0xef   : > { %2062 = vmax.xlane.f32.xlu1 %v2061_v0 }
  0xf0   : > { %v2055_v5 = vsel %vm2054_vm2, %v5112_v53, -inf }
  0xf1   : > { %v1444_v12 = vpop.f32.mrf.mxu3  ;;  %2056 = vmax.xlane.f32.xlu0 %v2055_v5 }
  0xf2   : > { %v5118_v19 = vadd.f32 %v1444_v12, %v1307_v40 }
  0xf3   : > { %v1409_v13 = vpop.f32.mrf.mxu2 }
  0xf4   : > { %v5120_v22 = vadd.f32 %v1409_v13, %v1307_v40  ;;  %v2073_v6 = vsel %vm2054_vm2, %v5118_v19, -inf }
  0xf6   : > { %v2067_v60 = vsel %vm2054_vm2, %v5120_v22, -inf }
  0xf7   : > { %2068 = vmax.xlane.f32.xlu2 %v2067_v60 }
  0xf9   : > { %2074 = vmax.xlane.f32.xlu0 %v2073_v6 }
  0xfa   : > { %v1377_v33 = vpop.f32.mrf.mxu1 }
  0xfb   : > { %v5129_v11 = vadd.f32 %v1377_v33, %v1308_v10 }
  0xfc   : > { %v1342_v34 = vpop.f32.mrf.mxu0 }
  0xfd   : > { %v2064_v15 = vsel %vm2054_vm2, %v5129_v11, -inf  ;;  %v5133_v17 = vadd.f32 %v1342_v34, %v1308_v10 }
  0xfe   : > { %2065 = vmax.xlane.f32.xlu1 %v2064_v15 }
  0xff   : > { %v1447_v18 = vpop.f32.mrf.mxu3  ;;  %v2058_v23 = vsel %vm2054_vm2, %v5133_v17, -inf }
 0x100   : > { %v5135_v48 = vadd.f32 %v1447_v18, %v1308_v10 }
 0x101   : > { %v1412_v14 = vpop.f32.mrf.mxu2  ;;  %2059 = vmax.xlane.f32.xlu0 %v2058_v23 }
 0x102   : > { %v5139_v24 = vadd.f32 %v1412_v14, %v1308_v10  ;;  %v2076_v61 = vsel %vm2054_vm2, %v5135_v48, -inf }
 0x104   : > { %v2070_v2 = vsel %vm2054_vm2, %v5139_v24, -inf }
 0x105   : > { %2071 = vmax.xlane.f32.xlu2 %v2070_v2 }
 0x106   : > { %2077 = vmax.xlane.f32.xlu1 %v2076_v61 }
 0x10a   : > { %v1514_v4 = vpop.f32.mrf.mxu1 }
 0x10b   : > { %v5145_v27 = vadd.f32 %v1514_v4, %v1307_v40 }
 0x10c   : > { %v1479_v7 = vpop.f32.mrf.mxu0 }
 0x10d   : > { %v5147_v62 = vadd.f32 %v1479_v7, %v1307_v40  ;;  %v2085_v28 = vsel %vm2054_vm2, %v5145_v27, -inf }
 0x10e   : > { %v1584_v35 = vpop.f32.mrf.mxu3  ;;  %2086 = vmax.xlane.f32.xlu1 %v2085_v28 }
 0x10f   : > { %v2079_v42 = vsel %vm2054_vm2, %v5147_v62, -inf  ;;  %v5155_v30 = vadd.f32 %v1584_v35, %v1307_v40 }
 0x110   : > { %v1549_v3 = vpop.f32.mrf.mxu2  ;;  %2080 = vmax.xlane.f32.xlu2 %v2079_v42 }
 0x111   : > { %v5153_v8 = vadd.f32 %v1549_v3, %v1307_v40  ;;  %6146 = vst [vmem:[#allocation6_spill] sm:$0xff] %v5155_v30  ;;  %v2097_v44 = vsel %vm2054_vm2, %v5155_v30, -inf }
 0x113   : > { %v2091_v9 = vsel %vm2054_vm2, %v5153_v8, -inf  ;;  %v1517_v49 = vpop.f32.mrf.mxu1 }
 0x114   : > { %2092 = vmax.xlane.f32.xlu0 %v2091_v9  ;;  %v5165_v54 = vadd.f32 %v1517_v49, %v1308_v10 }
 0x116   : > { %v1482_v32 = vpop.f32.mrf.mxu0  ;;  %v2088_v41 = vsel %vm2054_vm2, %v5165_v54, -inf }
 0x117   : > { %v5161_v43 = vadd.f32 %v1482_v32, %v1308_v10 }
 0x118   : > { %2098 = vmax.xlane.f32.xlu2 %v2097_v44  ;;  %v1587_v59 = vpop.f32.mrf.mxu3 }
 0x119   : > { %v2082_v50 = vsel %vm2054_vm2, %v5161_v43, -inf  ;;  %v5171_v25 = vadd.f32 %v1587_v59, %v1308_v10 }
 0x11a   : > { %v1552_v31 = vpop.f32.mrf.mxu2 }
 0x11b   : > { %v5167_v56 = vadd.f32 %v1552_v31, %v1308_v10  ;;  %6148 = vst [vmem:[#allocation8_spill] sm:$0xff] %v5171_v25  ;;  %v2100_v52 = vsel %vm2054_vm2, %v5171_v25, -inf  ;;  %v5183_v58 = vpop.f32.mrf.mxu1  ;;  %v2119_v31 = vlaneseq }
 0x11c   : > { %2083 = vmax.xlane.f32.xlu0 %v2082_v50  ;;  %v2197_v37 = vsel %vm2054_vm2, %v5183_v58, -inf }
 0x11d   : > { %6147 = vst [vmem:[#allocation7_spill] sm:$0xff] %v5167_v56  ;;  %v2094_v21 = vsel %vm2054_vm2, %v5167_v56, -inf  ;;  %v5241_v59 = vand.u32 127, %v2119_v31 }
 0x11e   : > { %2095 = vmax.xlane.f32.xlu1 %v2094_v21  ;;  %v5177_v39 = vpop.f32.mrf.mxu0 }
 0x11f   : > { %v2194_v1 = vsel %vm2054_vm2, %v5177_v39, -inf  ;;  %6154 = vst [vmem:[#allocation14_spill] sm:$0xff] %v5241_v59  ;;  %v5244_v21 = vadd.s32 4294967288, %v5241_v59 }
 0x120   : > { %2089 = vmax.xlane.f32.xlu2 %v2088_v41  ;;  %v5179_v55 = vpop.f32.mrf.mxu3 }
 0x121   : > { %v2203_v20 = vsel %vm2054_vm2, %v5179_v55, -inf  ;;  %6155 = vst [vmem:[#allocation15_spill] sm:$0xff] %v5244_v21 }
 0x122   : > { %v5187_v36 = vpop.f32.mrf.mxu2 }
 0x123   : > { %v2200_v51 = vsel %vm2054_vm2, %v5187_v36, -inf  ;;  %v5201_v40 = vpop.f32.mrf.mxu1 }
 0x124   : > { %2101 = vmax.xlane.f32.xlu0 %v2100_v52  ;;  %v2209_v16 = vsel %vm2054_vm2, %v5201_v40, -inf }
 0x126   : > { %v5195_v26 = vpop.f32.mrf.mxu0 }
 0x127   : > { %v2206_v57 = vsel %vm2054_vm2, %v5195_v26, -inf }
 0x128   : > { %2195 = vmax.xlane.f32.xlu2 %v2194_v1  ;;  %v5189_v63 = vpop.f32.mrf.mxu3 }
 0x129   : > { %v2215_v13 = vsel %vm2054_vm2, %v5189_v63, -inf }
 0x12a   : > { %v5205_v47 = vpop.f32.mrf.mxu2 }
 0x12b   : > { %v2212_v5 = vsel %vm2054_vm2, %v5205_v47, -inf  ;;  %v5219_v10 = vpop.f32.mrf.mxu1 }
 0x12c   : > { %2198 = vmax.xlane.f32.xlu0 %v2197_v37  ;;  %v2221_v33 = vsel %vm2054_vm2, %v5219_v10, -inf }
 0x12e   : > { %v5215_v60 = vpop.f32.mrf.mxu0 }
 0x12f   : > { %v2218_v6 = vsel %vm2054_vm2, %v5215_v60, -inf }
 0x130   : > { %2201 = vmax.xlane.f32.xlu2 %v2200_v51  ;;  %v5197_v46 = vpop.f32.mrf.mxu3 }
 0x131   : > { %6149 = vst [vmem:[#allocation9_spill] sm:$0xff] %v5197_v46  ;;  %v2227_v18 = vsel %vm2054_vm2, %v5197_v46, -inf }
 0x132   : > { %v5223_v34 = vpop.f32.mrf.mxu2 }
 0x133   : > { %6151 = vst [vmem:[#allocation11_spill] sm:$0xff] %v5223_v34  ;;  %v2224_v15 = vsel %vm2054_vm2, %v5223_v34, -inf  ;;  %v5233_v61 = vpop.f32.mrf.mxu1 }
 0x134   : > { %2204 = vmax.xlane.f32.xlu0 %v2203_v20  ;;  %6152 = vst [vmem:[#allocation12_spill] sm:$0xff] %v5233_v61  ;;  %v2233_v2 = vsel %vm2054_vm2, %v5233_v61, -inf }
 0x136   : > { %v5229_v23 = vpop.f32.mrf.mxu0 }
 0x137   : > { %v2230_v14 = vsel %vm2054_vm2, %v5229_v23, -inf }
 0x138   : > { %2207 = vmax.xlane.f32.xlu2 %v2206_v57  ;;  %v5207_v0 = vpop.f32.mrf.mxu3 }
 0x139   : > { %6150 = vst [vmem:[#allocation10_spill] sm:$0xff] %v5207_v0  ;;  %v2239_v12 = vsel %vm2054_vm2, %v5207_v0, -inf }
 0x13a   : > { %2240 = vmax.xlane.f32.xlu1 %v2239_v12  ;;  %v5237_v4 = vpop.f32.mrf.mxu2 }
 0x13b   : > { %6153 = vst [vmem:[#allocation13_spill] sm:$0xff] %v5237_v4  ;;  %v2236_v7 = vsel %vm2054_vm2, %v5237_v4, -inf }
 0x13c   : > { %2210 = vmax.xlane.f32.xlu0 %v2209_v16 }
 0x140   : > { %2213 = vmax.xlane.f32.xlu2 %v2212_v5 }
 0x144   : > { %2216 = vmax.xlane.f32.xlu0 %v2215_v13 }
 0x148   : > { %2219 = vmax.xlane.f32.xlu2 %v2218_v6 }
 0x14c   : > { %2222 = vmax.xlane.f32.xlu0 %v2221_v33 }
 0x150   : > { %2225 = vmax.xlane.f32.xlu2 %v2224_v15 }
 0x154   : > { %2228 = vmax.xlane.f32.xlu0 %v2227_v18 }
 0x158   : > { %2231 = vmax.xlane.f32.xlu2 %v2230_v14 }
 0x15c   : > { %2234 = vmax.xlane.f32.xlu0 %v2233_v2 }
 0x160   : > { %2237 = vmax.xlane.f32.xlu2 %v2236_v7 }
 0x162   : > { %v2063_v28 = vpop.xlane.xlu1 %2062 }
 0x163   : > { %v2126_v37 = vperm.slane %v2063_v28, %v5241_v59 }
 0x164   : > { %v2057_v35 = vpop.xlane.xlu0 %2056 }
 0x165   : > { %v2121_v51 = vperm.slane %v2057_v35, %v5241_v59 }
 0x16a   : > { %v2069_v42 = vpop.xlane.xlu2 %2068 }
 0x16b   : > { %v2129_v13 = vperm.slane %v2069_v42, %v5241_v59 }
 0x16c   : > { %v2075_v9 = vpop.xlane.xlu0 %2074 }
 0x16d   : > { %v2132_v28 = vperm.slane %v2075_v9, %v5241_v59 }
 0x171   : > { %v2066_v3 = vpop.xlane.xlu1 %2065 }
 0x172   : > { %v2127_v20 = vperm.slane %v2066_v3, %v5244_v21 }
 0x174   : > { %v2060_v49 = vpop.xlane.xlu0 %2059  ;;  %v2128_v12 = vsel %vm2124_vm3, %v2127_v20, %v2126_v37 }
 0x175   : > { %v2123_v1 = vperm.slane %v2060_v49, %v5244_v21 }
 0x177   : > { %v2125_v16 = vsel %vm2124_vm3, %v2123_v1, %v2121_v51 }
 0x178   : > { %v2072_v32 = vpop.xlane.xlu2 %2071  ;;  %v2148_v6 = vsel %vm2147_vm4, %v2128_v12, %v2125_v16 }
 0x179   : > { %v2078_v44 = vpop.xlane.xlu1 %2077  ;;  %v2130_v5 = vperm.slane %v2072_v32, %v5244_v21 }
 0x17a   : > { %v2133_v15 = vperm.slane %v2078_v44, %v5244_v21 }
 0x17b   : > { %v2131_v2 = vsel %vm2124_vm3, %v2130_v5, %v2129_v13 }
 0x17c   : > { %v2150_v35 = vsel %vm2149_vm5, %v2131_v2, %v2148_v6  ;;  %v2134_v44 = vsel %vm2124_vm3, %v2133_v15, %v2132_v28 }
 0x17d   : > { %v2152_v9 = vsel %vm2151_vm6, %v2134_v44, %v2150_v35 }
 0x181   : > { %v2087_v41 = vpop.xlane.xlu1 %2086 }
 0x182   : > { %v2138_v49 = vperm.slane %v2087_v41, %v5241_v59 }
 0x183   : > { %v2081_v50 = vpop.xlane.xlu2 %2080 }
 0x184   : > { %v2135_v7 = vperm.slane %v2081_v50, %v5241_v59 }
 0x187   : > { %v2093_v52 = vpop.xlane.xlu0 %2092 }
 0x188   : > { %v2141_v50 = vperm.slane %v2093_v52, %v5241_v59 }
 0x18b   : > { %v2099_v57 = vpop.xlane.xlu2 %2098 }
 0x18c   : > { %v2144_v12 = vperm.slane %v2099_v57, %v5241_v59 }
 0x18f   : > { %v2084_v33 = vpop.xlane.xlu0 %2083 }
 0x190   : > { %v2136_v14 = vperm.slane %v2084_v33, %v5244_v21  ;;  %v5277_v33 = vshrl.u32 %v2119_v31, 7 }
 0x191   : > { %v2096_v18 = vpop.xlane.xlu1 %2095 }
 0x192   : > { %v2142_v42 = vperm.slane %v2096_v18, %v5244_v21  ;;  %v2137_v3 = vsel %vm2124_vm3, %v2136_v14, %v2135_v7  ;;  %4306 = vset.pattern.permute.xlu2 %v5277_v33 }
 0x193   : > { %v2090_v32 = vpop.xlane.xlu2 %2089  ;;  %v2154_v51 = vsel %vm2153_vm7, %v2137_v3, %v2152_v9 }
 0x194   : > { %v2139_v1 = vperm.slane %v2090_v32, %v5244_v21  ;;  %v2143_v16 = vsel %vm2124_vm3, %v2142_v42, %v2141_v50 }
 0x196   : > { %v2140_v37 = vsel %vm2124_vm3, %v2139_v1, %v2138_v49 }
 0x197   : > { %v2102_v20 = vpop.xlane.xlu0 %2101  ;;  %v2156_v5 = vsel %vm2155_vm8, %v2140_v37, %v2154_v51 }
 0x198   : > { %v2145_v41 = vperm.slane %v2102_v20, %v5244_v21  ;;  %v2158_v13 = vsel %vm2157_vm9, %v2143_v16, %v2156_v5 }
 0x19a   : > { %v2146_v52 = vsel %vm2124_vm3, %v2145_v41, %v2144_v12 }
 0x19b   : > { %v2160_v6 = vsel %vm2159_vm10, %v2146_v52, %v2158_v13  ;;  %v2196_v15 = vpop.xlane.xlu2 %2195 }
 0x19c   : > { %2162 = vxpose.xlu1.b32.start.end [1/1] (short) (narrow) %v2160_v6, 16  ;;  %v2258_v32 = vperm.slane %v2196_v15, %v5241_v59 }
 0x19f   : > { %v2199_v18 = vpop.xlane.xlu0 %2198 }
 0x1a0   : > { %v2259_v44 = vperm.slane %v2199_v18, %v5241_v59 }
 0x1a2   : > { %v2274_v1 = vsel %vm2147_vm4, %v2259_v44, %v2258_v32 }
 0x1a3   : > { %v2202_v14 = vpop.xlane.xlu2 %2201 }
 0x1a4   : > { %v2260_v49 = vperm.slane %v2202_v14, %v5241_v59 }
 0x1a6   : > { %v2275_v9 = vsel %vm2149_vm5, %v2260_v49, %v2274_v1 }
 0x1a7   : > { %v2205_v57 = vpop.xlane.xlu0 %2204 }
 0x1a8   : > { %v2261_v50 = vperm.slane %v2205_v57, %v5241_v59 }
 0x1aa   : > { %v2276_v20 = vsel %vm2151_vm6, %v2261_v50, %v2275_v9 }
 0x1ab   : > { %v2208_v2 = vpop.xlane.xlu2 %2207 }
 0x1ac   : > { %v2262_v37 = vperm.slane %v2208_v2, %v5241_v59 }
 0x1ad   : > { %v2241_v15 = vpop.xlane.xlu1 %2240 }
 0x1ae   : > { %v2277_v13 = vsel %vm2153_vm7, %v2262_v37, %v2276_v20 }
 0x1af   : > { %v2211_v7 = vpop.xlane.xlu0 %2210 }
 0x1b0   : > { %v2263_v41 = vperm.slane %v2211_v7, %v5241_v59 }
 0x1b2   : > { %v2278_v14 = vsel %vm2155_vm8, %v2263_v41, %v2277_v13 }
 0x1b3   : > { %v2214_v28 = vpop.xlane.xlu2 %2213 }
 0x1b4   : > { %v2264_v18 = vperm.slane %v2214_v28, %v5241_v59 }
 0x1b6   : > { %v2279_v32 = vsel %vm2157_vm9, %v2264_v18, %v2278_v14 }
 0x1b7   : > { %v2217_v35 = vpop.xlane.xlu0 %2216 }
 0x1bb   : > { %v2220_v42 = vpop.xlane.xlu2 %2219 }
 0x1bc   : > { %v2266_v16 = vperm.slane %v2220_v42, %v5241_v59  ;;  %v2265_v42 = vperm.slane %v2217_v35, %v5241_v59 }
 0x1be   : > { %v2280_v28 = vsel %vm2159_vm10, %v2265_v42, %v2279_v32 }
 0x1bf   : > { %v2223_v3 = vpop.xlane.xlu0 %2222 }
 0x1c0   : > { %v2267_v5 = vperm.slane %v2223_v3, %v5241_v59 }
 0x1c2   : > { %v2281_v6 = vsel %vm2147_vm4, %v2267_v5, %v2266_v16  ;;  %v2273_v16 = vperm.slane %v2241_v15, %v5241_v59 }
 0x1c3   : > { %v2226_v31 = vpop.xlane.xlu2 %2225 }
 0x1c4   : > { %v2268_v52 = vperm.slane %v2226_v31, %v5241_v59 }
 0x1c6   : > { %v2282_v2 = vsel %vm2149_vm5, %v2268_v52, %v2281_v6 }
 0x1c7   : > { %v2229_v51 = vpop.xlane.xlu0 %2228 }
 0x1c8   : > { %v2269_v57 = vperm.slane %v2229_v51, %v5241_v59 }
 0x1ca   : > { %v2283_v44 = vsel %vm2151_vm6, %v2269_v57, %v2282_v2 }
 0x1cb   : > { %v2232_v12 = vpop.xlane.xlu2 %2231 }
 0x1cc   : > { %v2270_v3 = vperm.slane %v2232_v12, %v5241_v59 }
 0x1ce   : > { %v2284_v50 = vsel %vm2153_vm7, %v2270_v3, %v2283_v44 }
 0x1cf   : > { %v2235_v7 = vpop.xlane.xlu0 %2234 }
 0x1d0   : > { %v2271_v49 = vperm.slane %v2235_v7, %v5241_v59 }
 0x1d2   : > { %v2285_v20 = vsel %vm2155_vm8, %v2271_v49, %v2284_v50 }
 0x1d3   : > { %v2238_v31 = vpop.xlane.xlu2 %2237 }
 0x1d4   : > { %v2272_v9 = vperm.slane %v2238_v31, %v5241_v59 }
 0x1d6   : > { %v2286_v5 = vsel %vm2157_vm9, %v2272_v9, %v2285_v20 }
 0x1d7   : > { %v2287_v41 = vsel %vm2159_vm10, %v2273_v16, %v2286_v5 }
 0x1ef   : > { %4305 = vset.pattern.permute.xlu1 %v5277_v33 }
 0x240   : > { %v2178_v1 = vpop.trf.xlu1 }
 0x241   : > { %v2290_v37 = vmax.f32 %v2178_v1, %v2280_v28  ;;  %v5313_v1 = vadd.s32 8, %v5277_v33 }
 0x243   : > { %2292 = vxpose.xlu0.b32.start [1/2] (short) (narrow) %v2290_v37, 8  ;;  %v2483_v35 = vperm.slane %v2290_v37, 1  ;;  %v2476_v51 = vperm.slane %v2290_v37, 0  ;;  %v2497_v52 = vperm.slane %v2290_v37, 3  ;;  %v2490_v6 = vperm.slane %v2290_v37, 2 }
 0x244   : > { %v2511_v18 = vperm.slane %v2290_v37, 5  ;;  %v2504_v14 = vperm.slane %v2290_v37, 4  ;;  %v2525_v57 = vperm.slane %v2290_v37, 7  ;;  %v2518_v2 = vperm.slane %v2290_v37, 6 }
 0x245   : > { %2488 = vperm.xlu2 %4306, %v2483_v35   ;;  %2481 = vperm.xlu1 %4305, %v2476_v51  }
 0x248   : > { %v2179_v12 = vpop.trf.xlu1 }
 0x249   : > { %v2291_v13 = vmax.f32 %v2179_v12, %v2287_v41 }
 0x24b   : > { %2293 = vxpose.xlu0.b32.end [2/2] (short) (narrow) %v2291_v13, 8  ;;  %v2546_v15 = vperm.slane %v2291_v13, 2  ;;  %v2532_v42 = vperm.slane %v2291_v13, 0  ;;  %v2560_v3 = vperm.slane %v2291_v13, 4  ;;  %v2553_v7 = vperm.slane %v2291_v13, 3 }
 0x24c   : > { %v2581_v32 = vperm.slane %v2291_v13, 7  ;;  %v2567_v44 = vperm.slane %v2291_v13, 5  ;;  %v2539_v31 = vperm.slane %v2291_v13, 1  ;;  %v2574_v49 = vperm.slane %v2291_v13, 6 }
 0x24d   : > { %2502 = vperm.xlu2 %4306, %v2497_v52   ;;  %2495 = vperm.xlu1 %4305, %v2490_v6  }
 0x255   : > { %2516 = vperm.xlu2 %4306, %v2511_v18   ;;  %2509 = vperm.xlu1 %4305, %v2504_v14  }
 0x25d   : > { %2530 = vperm.xlu2 %4306, %v2525_v57   ;;  %2523 = vperm.xlu1 %4305, %v2518_v2  }
 0x265   : > { %2551 = vperm.xlu2 %4306, %v2546_v15   ;;  %2537 = vperm.xlu1 %4305, %v2532_v42   ;;  %v5354_v15 = vld [vmem:[%s5351_s11 + $0xf0] sm:$0xff] }
 0x26d   : > { %2565 = vperm.xlu2 %4306, %v2560_v3   ;;  %2558 = vperm.xlu1 %4305, %v2553_v7   ;;  %v5361_v3 = vld [vmem:[%s5351_s11 + $0xb0] sm:$0xff] }
 0x26e   : > { %v5364_v7 = vld [vmem:[%s5351_s11 + $0xd0] sm:$0xff] }
 0x275   : > { %2586 = vperm.xlu2 %4306, %v2581_v32   ;;  %2572 = vperm.xlu1 %4305, %v2567_v44   ;;  %v5367_v32 = vld [vmem:[%s5351_s11 + $0xe0] sm:$0xff]  ;;  %v1207_v44 = vrot.slane %v5361_v3, 4 }
 0x29f   : > { %v2489_v35 = vpop.permute.xlu2 %2488 }
 0x2a0   : > { %v2589_v51 = vsub.f32 %v5183_v58, %v2489_v35 }
 0x2a2   : > { %v2606_v16 = vmul.f32 1.442695, %v2589_v51  ;;  %v5379_v51 = vld [vmem:[%s5351_s11 + $0x90] sm:$0xff] }
 0x2a4   : > { %4322 = vpow2.f32 %v2606_v16  ;;  %v5385_v16 = vld [vmem:[%s5351_s11 + $0xc0] sm:$0xff] }
 0x2a7   : > { %v2503_v20 = vpop.permute.xlu2 %2502 }
 0x2a8   : > { %v2591_v12 = vsub.f32 %v5179_v55, %v2503_v20  ;;  %v5382_v20 = vld [vmem:[%s5351_s11 + $0xa0] sm:$0xff] }
 0x2aa   : > { %v2610_v13 = vmul.f32 1.442695, %v2591_v12  ;;  %v5330_v52 = vpop.eup %4322 }
 0x2ab   : > { %6156 = vst [vmem:[#allocation16_spill] sm:$0xff] %v5330_v52  ;;  %v2767_v58 = vsel %vm2054_vm2, %v5330_v52, 0.0 }
 0x2ac   : > { %4324 = vpow2.f32 %v2610_v13  ;;  %v1208_v13 = vsel %vm635_vm0, %v1207_v44, %v5379_v51  ;;  %v5416_v44 = vld [vmem:[%s5351_s11 + $0x10] sm:$0xff] }
 0x2af   : > { %v2517_v41 = vpop.permute.xlu2 %2516 }
 0x2b0   : > { %v2593_v6 = vsub.f32 %v5201_v40, %v2517_v41  ;;  %v1195_v41 = vrot.slane %v5382_v20, 4 }
 0x2b2   : > { %4307 = vset.pattern.permute.xlu0 %v5277_v33  ;;  %v2614_v18 = vmul.f32 1.442695, %v2593_v6  ;;  %v5336_v57 = vpop.eup %4324 }
 0x2b3   : > { %6157 = vst [vmem:[#allocation17_spill] sm:$0xff] %v5336_v57  ;;  %v2773_v40 = vsel %vm2054_vm2, %v5336_v57, 0.0 }
 0x2b4   : > { %4326 = vpow2.f32 %v2614_v18  ;;  %v5400_v18 = vld [vmem:[%s5351_s11 + $0x50] sm:$0xff] }
 0x2b7   : > { %v2531_v14 = vpop.permute.xlu2 %2530 }
 0x2b8   : > { %v2595_v55 = vsub.f32 %v5189_v63, %v2531_v14  ;;  %v1231_v63 = vrot.slane %v5354_v15, 4  ;;  %v5403_v14 = vld [vmem:[%s5351_s11 + $0x60] sm:$0xff] }
 0x2ba   : > { %2544 = vperm.xlu0 %4307, %v2539_v31   ;;  %v2618_v2 = vmul.f32 1.442695, %v2595_v55  ;;  %v5356_v42 = vpop.eup %4326  ;;  %v1219_v31 = vrot.slane %v5367_v32, 4  ;;  %v5406_v55 = vld [vmem:[%s5351_s11 + $0x80] sm:$0xff] }
 0x2bb   : > { %6158 = vst [vmem:[#allocation18_spill] sm:$0xff] %v5356_v42  ;;  %v2779_v35 = vsel %vm2054_vm2, %v5356_v42, 0.0 }
 0x2bc   : > { %4328 = vpow2.f32 %v2618_v2  ;;  %v1220_v6 = vsel %vm635_vm0, %v1219_v31, %v5385_v16  ;;  %v5419_v31 = vld [vmem:[%s5351_s11 + $0x20] sm:$0xff] }
 0x2bd   : > { %v5412_v2 = vperm.slane %v1220_v6, %v4633_v38 }
 0x2bf   : > { %v5431_v21 = vpop.permute.xlu2 %2551 }
 0x2c0   : > { %6159 = vst [vmem:[#allocation19_spill] sm:$0xff] %v5431_v21 }
 0x2c2   : > { %2579 = vperm.xlu0 %4307, %v2574_v49   ;;  %v1232_v49 = vsel %vm635_vm0, %v1231_v63, %v5364_v7  ;;  %v5444_v25 = vpop.eup %4328 }
 0x2c3   : > { %6160 = vst [vmem:[#allocation20_spill] sm:$0xff] %v5444_v25 }
 0x2ca   : > { %4312 = vset.pattern.permute.xlu0 %v5313_v1 }
 0x2e7   : > { %v5316_v28 = vpop.trf.xlu0 }
 0x2e8   : > { %v2324_v50 = vperm.slane %v5316_v28, 0  ;;  %v6126_v9 = vperm.slane %v5316_v28, 2  ;;  %v6125_v37 = vperm.slane %v5316_v28, 6  ;;  %v2337_v5 = vperm.slane %v5316_v28, 1 }
 0x2ea   : > { %2329 = vperm.xlu2 %4306, %v2324_v50   ;;  %2361 = vperm.xlu0 %4312, %v6126_v9   ;;  %v1083_v9 = vrot.slane %v5419_v31, 4 }
 0x2eb   : > { %2407 = vperm.xlu1 %4305, %v6125_v37   ;;  %v5425_v37 = vld [vmem:[%s5351_s11 + $0x40] sm:$0xff] }
 0x2f2   : > { %4308 = vset.pattern.permute.xlu2 %v5313_v1 }
 0x2fa   : > { %2335 = vperm.xlu2 %4308, %v2324_v50   ;;  %v5374_v50 = vld [vmem:[%s5351_s11 + $0x70] sm:$0xff] }
 0x2fb   : > { %v1119_v12 = vrot.slane %v5374_v50, 4 }
 0x2fd   : > { %v1120_v6 = vsel %vm635_vm0, %v1119_v12, %v5400_v18 }
 0x302   : > { %4309 = vset.pattern.permute.xlu2 %v5277_v33 }
 0x30a   : > { %2342 = vperm.xlu2 %4309, %v2337_v5  }
 0x312   : > { %4310 = vset.pattern.permute.xlu2 %v5313_v1 }
 0x315   : > { %2768 = vadd.xlane.f32.xlu1 %v2767_v58  ;;  %v5397_v58 = vld [vmem:[%s5351_s11 + $0x30] sm:$0xff] }
 0x31a   : > { %2348 = vperm.xlu2 %4310, %v2337_v5   ;;  %v5388_v5 = vperm.slane %v1232_v49, %v4633_v38  ;;  %v1095_v49 = vrot.slane %v5397_v58, 4 }
 0x31c   : > { %v1267_v63 = vrot.slane %v5388_v5, 4  ;;  %v1096_v57 = vsel %vm635_vm0, %v1095_v49, %v5416_v44 }
 0x31d   : > { %2774 = vadd.xlane.f32.xlu1 %v2773_v40  ;;  %v5409_v40 = vperm.slane %v1208_v13, %v4633_v38  ;;  %v1107_v13 = vrot.slane %v5403_v14, 4 }
 0x31e   : > { %v1268_v46 = vsel %vm635_vm0, %v1267_v63, %v5412_v2  ;;  %v6161_v63 = vperm.slane %v5316_v28, 2 }
 0x31f   : > { %v1243_v0 = vrot.slane %v5409_v40, 4  ;;  %v1274_v4 = vperm.slane %v1268_v46, %v4651_v45  ;;  %v1108_v61 = vsel %vm635_vm0, %v1107_v13, %v5425_v37  ;;  %v5468_v13 = vperm.slane %v1120_v6, %v4633_v38 }
 0x321   : > { %v1291_v30 = vrot.slane %v1274_v4, 4  ;;  %v1155_v34 = vrot.slane %v5468_v13, 4 }
 0x322   : > { %4311 = vset.pattern.permute.xlu2 %v5277_v33 }
 0x325   : > { %2780 = vadd.xlane.f32.xlu1 %v2779_v35  ;;  %v1196_v35 = vsel %vm635_vm0, %v1195_v41, %v5406_v55  ;;  %v5440_v41 = vld [vmem:[%s5351_s11] sm:$0xff] }
 0x326   : > { %v5434_v59 = vperm.slane %v1196_v35, %v4633_v38  ;;  %v1084_v12 = vsel %vm635_vm0, %v1083_v9, %v5440_v41  ;;  %v5450_v35 = vperm.slane %v1096_v57, %v4633_v38  ;;  %v2785_v9 = vsel %vm2054_vm2, %v5444_v25, 0.0 }
 0x327   : > { %v5460_v46 = vperm.slane %v1084_v12, %v4633_v38  ;;  %v5465_v57 = vperm.slane %v1108_v61, %v4633_v38  ;;  %v2363_v61 = vperm.slane %v5316_v28, 3 }
 0x328   : > { %v1244_v42 = vsel %vm635_vm0, %v1243_v0, %v5434_v59 }
 0x329   : > { %v1250_v49 = vperm.slane %v1244_v42, %v4651_v45  ;;  %v1156_v6 = vsel %vm635_vm0, %v1155_v34, %v5465_v57 }
 0x32a   : > { %2355 = vperm.xlu2 %4311, %v6161_v63   ;;  %v1131_v63 = vrot.slane %v5450_v35, 4 }
 0x32b   : > { %v1292_v42 = vsel %vm635_vm0, %v1291_v30, %v1250_v49 }
 0x32c   : > { %v2545_v52 = vpop.permute.xlu0 %2544  ;;  %2888 = vmatpush.msra.mxu0 %v1292_v42  ;;  %v1132_v12 = vsel %vm635_vm0, %v1131_v63, %v5460_v46 }
 0x32d   : > { %v2597_v0 = vsub.f32 %v5219_v10, %v2545_v52  ;;  %2786 = vadd.xlane.f32.xlu1 %v2785_v9  ;;  %v1138_v21 = vperm.slane %v1132_v12, %v4651_v45  ;;  %v1162_v10 = vperm.slane %v1156_v6, %v4651_v45  ;;  %v5481_v52 = vpop.permute.xlu2 %2565  ;;  %v5492_v6 = vpop.permute.xlu1 %2481 }
 0x32f   : > { %v2622_v25 = vmul.f32 1.442695, %v2597_v0  ;;  %v1179_v30 = vrot.slane %v1162_v10, 4 }
 0x331   : > { %4330 = vpow2.f32 %v2622_v25  ;;  %v1180_v9 = vsel %vm635_vm0, %v1179_v30, %v1138_v21  ;;  %v1293_v30 = vrot.slane %v1250_v49, 4 }
 0x332   : > { %2368 = vperm.xlu2 %4311, %v2363_v61   ;;  %2889 = vmatpush.msra.mxu0 %v1180_v9  ;;  %v1181_v9 = vrot.slane %v1138_v21, 4 }
 0x333   : > { %v1294_v56 = vsel %vm635_vm0, %v1274_v4, %v1293_v30  ;;  %v1269_v30 = vrot.slane %v5412_v2, 4  ;;  %v1133_v2 = vrot.slane %v5460_v46, 4 }
 0x334   : > { %2917 = vmatpush.msra.mxu1 %v1294_v56 }
 0x335   : > { %v5489_v25 = vpop.permute.xlu2 %2586 }
 0x337   : > { %v5484_v63 = vpop.eup %4330 }
 0x338   : > { %6162 = vst [vmem:[#allocation21_spill] sm:$0xff] %v5484_v63  ;;  %v2791_v0 = vsel %vm2054_vm2, %v5484_v63, 0.0 }
 0x339   : > { %2792 = vadd.xlane.f32.xlu1 %v2791_v0  ;;  %v1182_v0 = vsel %vm635_vm0, %v1162_v10, %v1181_v9 }
 0x33a   : > { %4313 = vset.pattern.permute.xlu2 %v5313_v1  ;;  %2918 = vmatpush.msra.mxu1 %v1182_v0  ;;  %v1245_v0 = vrot.slane %v5434_v59, 4 }
 0x342   : > { %2374 = vperm.xlu2 %4313, %v2363_v61  }
 0x344   : > { %v2330_v34 = vpop.permute.xlu2 %2329 }
 0x345   : > { %v2428_v42 = vsub.f32 %v5112_v53, %v2330_v34  ;;  %v2376_v53 = vperm.slane %v5316_v28, 4  ;;  %v5500_v34 = vpop.permute.xlu1 %2495 }
 0x347   : > { %v2444_v12 = vmul.f32 1.442695, %v2428_v42 }
 0x349   : > { %4332 = vpow2.f32 %v2444_v12 }
 0x34a   : > { %4314 = vset.pattern.permute.xlu2 %v5277_v33 }
 0x34d   : > { %v5504_v56 = vpop.permute.xlu1 %2509 }
 0x34f   : > { %v4333_v63 = vpop.eup %4332 }
 0x350   : > { %4207 = vmatmul.msk.f32.vlgmr.msra.gmra.mxu0 %vm2054_vm2, %v4333_v63  ;;  %v2636_v61 = vsel %vm2054_vm2, %v4333_v63, 0.0 }
 0x351   : > { %2637 = vadd.xlane.f32.xlu1 %v2636_v61  ;;  %v1270_v61 = vsel %vm635_vm0, %v5388_v5, %v1269_v30 }
 0x352   : > { %2381 = vperm.xlu2 %4314, %v2376_v53  }
 0x354   : > { %v2336_v42 = vpop.permute.xlu2 %2335 }
 0x355   : > { %v2429_v21 = vsub.f32 %v5133_v17, %v2336_v42  ;;  %v5510_v17 = vpop.permute.xlu1 %2523  ;;  %v1157_v42 = vrot.slane %v5465_v57, 4  ;;  %v1134_v57 = vsel %vm635_vm0, %v5450_v35, %v1133_v2  ;;  %v1197_v35 = vrot.slane %v5406_v55, 4 }
 0x357   : > { %v2446_v49 = vmul.f32 1.442695, %v2429_v21  ;;  %v1278_v21 = vperm.slane %v1270_v61, %v4651_v45  ;;  %v1198_v55 = vsel %vm635_vm0, %v5382_v20, %v1197_v35 }
 0x359   : > { %4334 = vpow2.f32 %v2446_v49  ;;  %v1295_v49 = vrot.slane %v1278_v21, 4 }
 0x35a   : > { %4315 = vset.pattern.permute.xlu2 %v5313_v1 }
 0x35d   : > { %v5536_v30 = vpop.permute.xlu1 %2537 }
 0x35f   : > { %v4335_v4 = vpop.eup %4334 }
 0x360   : > { %4208 = vmatmul.msk.f32.gmra.mxu0 %vm2054_vm2, %v4335_v4  ;;  %v2639_v10 = vsel %vm2054_vm2, %v4335_v4, 0.0 }
 0x361   : > { %2640 = vadd.xlane.f32.xlu0 %v2639_v10  ;;  %v1142_v10 = vperm.slane %v1134_v57, %v4651_v45 }
 0x362   : > { %2387 = vperm.xlu2 %4315, %v2376_v53   ;;  %v1158_v53 = vsel %vm635_vm0, %v5468_v13, %v1157_v42  ;;  %v1221_v13 = vrot.slane %v5385_v16, 4  ;;  %v1085_v42 = vrot.slane %v5440_v41, 4  ;;  %v1209_v41 = vrot.slane %v5379_v51, 4 }
 0x363   : > { %v1166_v5 = vperm.slane %v1158_v53, %v4651_v45  ;;  %v1185_v61 = vrot.slane %v1142_v10, 4 }
 0x364   : > { %v2343_v63 = vpop.permute.xlu2 %2342  ;;  %v1222_v53 = vsel %vm635_vm0, %v5367_v32, %v1221_v13  ;;  %v1210_v20 = vsel %vm635_vm0, %v5361_v3, %v1209_v41  ;;  %v1086_v51 = vsel %vm635_vm0, %v5419_v31, %v1085_v42 }
 0x365   : > { %v2430_v12 = vsub.f32 %v5110_v29, %v2343_v63  ;;  %v1246_v29 = vsel %vm635_vm0, %v5409_v40, %v1245_v0  ;;  %v1183_v63 = vrot.slane %v1166_v5, 4  ;;  %v1186_v2 = vsel %vm635_vm0, %v1166_v5, %v1185_v61 }
 0x366   : > { %v1254_v59 = vperm.slane %v1246_v29, %v4651_v45  ;;  %v1094_v31 = vperm.slane %v1086_v51, %v4633_v38 }
 0x367   : > { %v2448_v9 = vmul.f32 1.442695, %v2430_v12  ;;  %v1184_v46 = vsel %vm635_vm0, %v1183_v63, %v1142_v10  ;;  %v2389_v12 = vperm.slane %v5316_v28, 5 }
 0x368   : > { %v1296_v4 = vsel %vm635_vm0, %v1295_v49, %v1254_v59  ;;  %v1297_v0 = vrot.slane %v1254_v59, 4  ;;  %v1233_v49 = vrot.slane %v5364_v7, 4  ;;  %v5558_v7 = vperm.slane %v1198_v55, %v4633_v38 }
 0x369   : > { %4336 = vpow2.f32 %v2448_v9  ;;  %2946 = vmatpush.msra.mxu2 %v1296_v4  ;;  %v1109_v9 = vrot.slane %v5425_v37, 4  ;;  %v5548_v37 = vperm.slane %v1222_v53, %v4633_v38  ;;  %v1218_v4 = vperm.slane %v1210_v20, %v4633_v38 }
 0x36a   : > { %4316 = vset.pattern.permute.xlu2 %v5277_v33  ;;  %v1298_v16 = vsel %vm635_vm0, %v1278_v21, %v1297_v0  ;;  %v1234_v21 = vsel %vm635_vm0, %v5354_v15, %v1233_v49  ;;  %v1097_v15 = vrot.slane %v5416_v44, 4  ;;  %v1257_v10 = vrot.slane %v5558_v7, 4  ;;  %v5587_v0 = vpop.permute.xlu1 %2558 }
 0x36b   : > { %2947 = vmatpush.msra.mxu2 %v1184_v46  ;;  %2975 = vmatpush.msra.mxu3 %v1298_v16  ;;  %v1110_v59 = vsel %vm635_vm0, %v5403_v14, %v1109_v9  ;;  %v1281_v5 = vrot.slane %v5548_v37, 4  ;;  %v1121_v46 = vrot.slane %v5400_v18, 4  ;;  %v1145_v16 = vrot.slane %v1094_v31, 4 }
 0x36c   : > { %v5570_v14 = vperm.slane %v1110_v59, %v4633_v38  ;;  %v1098_v44 = vsel %vm635_vm0, %v5397_v58, %v1097_v15  ;;  %v1258_v13 = vsel %vm635_vm0, %v1218_v4, %v1257_v10  ;;  %v5595_v58 = vpop.permute.xlu0 %2579 }
 0x36d   : > { %2976 = vmatpush.msra.mxu3 %v1186_v2  ;;  %v1106_v35 = vperm.slane %v1098_v44, %v4633_v38  ;;  %v5590_v61 = vperm.slane %v1258_v13, %v4651_v45 }
 0x36e   : > { %v1169_v9 = vrot.slane %v5570_v14, 4 }
 0x36f   : > { %v5529_v40 = vpop.eup %4336  ;;  %v1146_v53 = vsel %vm635_vm0, %v1106_v35, %v1145_v16  ;;  %v1255_v16 = vrot.slane %v1218_v4, 4 }
 0x370   : > { %4209 = vmatmul.msk.f32.vlgmr.msra.gmra.mxu1 %vm2054_vm2, %v5529_v40 }
 0x372   : > { %2394 = vperm.xlu2 %4316, %v2389_v12   ;;  %v5614_v51 = vpop.permute.xlu1 %2572 }
 0x374   : > { %v2349_v29 = vpop.permute.xlu2 %2348 }
 0x375   : > { %v2431_v57 = vsub.f32 %v5129_v11, %v2349_v29  ;;  %v5561_v11 = vperm.slane %v1234_v21, %v4633_v38  ;;  %v1122_v29 = vsel %vm635_vm0, %v5374_v50, %v1121_v46  ;;  %v5605_v50 = vperm.slane %v1146_v53, %v4651_v45 }
 0x376   : > { %v1130_v18 = vperm.slane %v1122_v29, %v4633_v38  ;;  %v1143_v53 = vrot.slane %v1106_v35, 4 }
 0x377   : > { %v2450_v32 = vmul.f32 1.442695, %v2431_v57  ;;  %v1282_v63 = vsel %vm635_vm0, %v5561_v11, %v1281_v5  ;;  %v2362_v5 = vpop.permute.xlu0 %2361  ;;  %v1279_v29 = vrot.slane %v5561_v11, 4  ;;  %v1256_v11 = vsel %vm635_vm0, %v1255_v16, %v5558_v7  ;;  %v576_v16 = vld [vmem:[%s5343_s8 + $0x40] sm:$0xff] }
 0x378   : > { %v5578_v3 = vperm.slane %v1282_v63, %v4651_v45  ;;  %v1170_v57 = vsel %vm635_vm0, %v1130_v18, %v1169_v9  ;;  %v2433_v10 = vsub.f32 %v5139_v24, %v2362_v5  ;;  %v6163_v63 = vperm.slane %v5316_v28, 6 }
 0x379   : > { %4338 = vpow2.f32 %v2450_v32  ;;  %v5608_v41 = vperm.slane %v1170_v57, %v4651_v45  ;;  %v1262_v57 = vperm.slane %v1256_v11, %v4651_v45 }
 0x37a   : > { %4317 = vset.pattern.permute.xlu2 %v5313_v1  ;;  %v1303_v42 = vrot.slane %v5578_v3, 4  ;;  %v2408_v13 = vpop.permute.xlu1 %2407 }
 0x37b   : > { %v1191_v21 = vrot.slane %v5608_v41, 4  ;;  %v2440_v24 = vsub.f32 %v5153_v8, %v2408_v13  ;;  %v1144_v8 = vsel %vm635_vm0, %v1143_v53, %v1094_v31 }
 0x37c   : > { %v1304_v2 = vsel %vm635_vm0, %v1303_v42, %v5590_v61 }
 0x37d   : > { %3062 = vmatpush.msrb.mxu2 %v1304_v2  ;;  %v1192_v32 = vsel %vm635_vm0, %v1191_v21, %v5605_v50  ;;  %v1280_v2 = vsel %vm635_vm0, %v1279_v29, %v5548_v37  ;;  %v2468_v21 = vmul.f32 1.442695, %v2440_v24  ;;  %v1150_v37 = vperm.slane %v1144_v8, %v4651_v45  ;;  %v577_v29 = vld [vmem:[%s5343_s8 + $0x48] sm:$0xff] }
 0x37e   : > { %v2592_v8 = vsub.f32 %v5195_v26, %v5504_v56  ;;  %v584_v56 = vld [vmem:[%s5343_s8 + $0x80] sm:$0xff] }
 0x37f   : > { %v4339_v49 = vpop.eup %4338  ;;  %3063 = vmatpush.msrb.mxu2 %v1192_v32 }
 0x380   : > { %4210 = vmatmul.msk.f32.gmra.mxu1 %vm2054_vm2, %v4339_v49  ;;  %v2645_v55 = vsel %vm2054_vm2, %v4339_v49, 0.0  ;;  %v1167_v49 = vrot.slane %v1130_v18, 4 }
 0x381   : > { %2646 = vadd.xlane.f32.xlu1 %v2645_v55 }
 0x382   : > { %2400 = vperm.xlu2 %4317, %v2389_v12   ;;  %v2454_v12 = vmul.f32 1.442695, %v2433_v10  ;;  %v1168_v4 = vsel %vm635_vm0, %v1167_v49, %v5570_v14  ;;  %v2415_v14 = vperm.slane %v5316_v28, 7 }
 0x384   : > { %v2356_v59 = vpop.permute.xlu2 %2355 }
 0x385   : > { %v2432_v20 = vsub.f32 %v5120_v22, %v2356_v59  ;;  %v1174_v59 = vperm.slane %v1168_v4, %v4651_v45 }
 0x387   : > { %v2452_v15 = vmul.f32 1.442695, %v2432_v20  ;;  %v1187_v7 = vrot.slane %v1174_v59, 4 }
 0x389   : > { %4340 = vpow2.f32 %v2452_v15  ;;  %v1188_v5 = vsel %vm635_vm0, %v1187_v7, %v1150_v37 }
 0x38a   : > { %2413 = vperm.xlu2 %4317, %v6163_v63   ;;  %4342 = vpow2.f32 %v2454_v12 }
 0x38c   : > { %v2369_v44 = vpop.permute.xlu2 %2368 }
 0x38d   : > { %v2434_v46 = vsub.f32 %v5118_v19, %v2369_v44  ;;  %v1286_v19 = vperm.slane %v1280_v2, %v4651_v45 }
 0x38f   : > { %v4341_v9 = vpop.eup %4340  ;;  %v2456_v42 = vmul.f32 1.442695, %v2434_v46  ;;  %v1299_v55 = vrot.slane %v1286_v19, 4 }
 0x390   : > { %4211 = vmatmul.msk.f32.vlgmr.msra.gmra.mxu2 %vm2054_vm2, %v4341_v9  ;;  %v2648_v22 = vsel %vm2054_vm2, %v4341_v9, 0.0  ;;  %v5636_v32 = vpop.eup %4342  ;;  %v568_v9 = vld [vmem:[%s5343_s8] sm:$0xff] }
 0x391   : > { %4344 = vpow2.f32 %v2456_v42  ;;  %2649 = vadd.xlane.f32.xlu0 %v2648_v22  ;;  %v1300_v35 = vsel %vm635_vm0, %v1299_v55, %v1262_v57  ;;  %v1189_v22 = vrot.slane %v1150_v37, 4  ;;  %v2590_v55 = vsub.f32 %v5187_v36, %v5500_v34  ;;  %v585_v37 = vld [vmem:[%s5343_s8 + $0x88] sm:$0xff]  ;;  %v570_v34 = vld [vmem:[%s5343_s8 + $0x10] sm:$0xff] }
 0x392   : > { %4318 = vset.pattern.permute.xlu2 %v5277_v33  ;;  %3004 = vmatpush.msrb.mxu0 %v1300_v35  ;;  %4346 = vpow2.f32 %v2468_v21  ;;  %v2612_v21 = vmul.f32 1.442695, %v2592_v8  ;;  %v587_v8 = vld [vmem:[%s5343_s8 + $0x98] sm:$0xff] }
 0x393   : > { %v2608_v4 = vmul.f32 1.442695, %v2590_v55 }
 0x394   : > { %3005 = vmatpush.msrb.mxu0 %v1188_v5  ;;  %v593_v5 = vld [vmem:[%s5343_s8 + $0xc8] sm:$0xff] }
 0x397   : > { %v4345_v18 = vpop.eup %4344 }
 0x398   : > { %4212 = vmatmul.msk.f32.gmra.mxu2 %vm2054_vm2, %v5636_v32  ;;  %4213 = vmatmul.msk.f32.vlgmr.msra.gmra.mxu3 %vm2054_vm2, %v4345_v18  ;;  %v2654_v31 = vsel %vm2054_vm2, %v4345_v18, 0.0  ;;  %v4347_v10 = vpop.eup %4346  ;;  %v2596_v18 = vsub.f32 %v5215_v60, %v5536_v30  ;;  %v2600_v60 = vsub.f32 %v5229_v23, %v5481_v52  ;;  %v579_v30 = vld [vmem:[%s5343_s8 + $0x58] sm:$0xff] }
 0x399   : > { %2655 = vadd.xlane.f32.xlu1 %v2654_v31  ;;  %v2672_v26 = vsel %vm2054_vm2, %v4347_v10, 0.0 }
 0x39a   : > { %2420 = vperm.xlu2 %4318, %v2415_v14   ;;  %v2620_v31 = vmul.f32 1.442695, %v2596_v18 }
 0x39c   : > { %v2375_v20 = vpop.permute.xlu2 %2374 }
 0x39d   : > { %v2435_v15 = vsub.f32 %v5135_v48, %v2375_v20  ;;  %v569_v48 = vld [vmem:[%s5343_s8 + $0x8] sm:$0xff] }
 0x39e   : > { %3341 = vmatpush.msra.mxu0 %v569_v48  ;;  %v573_v20 = vld [vmem:[%s5343_s8 + $0x28] sm:$0xff] }
 0x39f   : > { %v2458_v63 = vmul.f32 1.442695, %v2435_v15  ;;  %3387 = vmatpush.msra.mxu2 %v573_v20  ;;  %v6170_v20 = vld [vmem:[#allocation12_spill] sm:$0xff] }
 0x3a0   : > { %4219 = vmatmul.msk.f32.vlgmr.msrb.gmra.mxu2 %vm2054_vm2, %v4347_v10  ;;  %3342 = vmatpush.msra.mxu0 %v568_v9  ;;  %v2594_v10 = vsub.f32 %v5205_v47, %v5510_v17  ;;  %v2628_v47 = vmul.f32 1.442695, %v2600_v60  ;;  %v581_v9 = vld [vmem:[%s5343_s8 + $0x68] sm:$0xff] }
 0x3a1   : > { %4348 = vpow2.f32 %v2458_v63 }
 0x3a2   : > { %4319 = vset.pattern.permute.xlu2 %v5313_v1  ;;  %v1301_v1 = vrot.slane %v1262_v57, 4  ;;  %v2616_v52 = vmul.f32 1.442695, %v2594_v10 }
 0x3a4   : > { %v1302_v42 = vsel %vm635_vm0, %v1286_v19, %v1301_v1  ;;  %v2588_v19 = vsub.f32 %v5177_v39, %v5492_v6  ;;  %v1193_v1 = vrot.slane %v5605_v50, 4 }
 0x3a5   : > { %3033 = vmatpush.msrb.mxu1 %v1302_v42  ;;  %v580_v42 = vld [vmem:[%s5343_s8 + $0x60] sm:$0xff] }
 0x3a6   : > { %v2604_v11 = vmul.f32 1.442695, %v2588_v19  ;;  %v6166_v19 = vld [vmem:[#allocation11_spill] sm:$0xff] }
 0x3a7   : > { %v4349_v12 = vpop.eup %4348 }
 0x3a8   : > { %4214 = vmatmul.msk.f32.gmra.mxu3 %vm2054_vm2, %v4349_v12  ;;  %v2657_v28 = vsel %vm2054_vm2, %v4349_v12, 0.0  ;;  %v592_v12 = vld [vmem:[%s5343_s8 + $0xc0] sm:$0xff] }
 0x3a9   : > { %2658 = vadd.xlane.f32.xlu0 %v2657_v28  ;;  %v572_v28 = vld [vmem:[%s5343_s8 + $0x20] sm:$0xff] }
 0x3aa   : > { %2426 = vperm.xlu2 %4319, %v2415_v14   ;;  %3388 = vmatpush.msra.mxu2 %v572_v28 }
 0x3ac   : > { %v2382_v44 = vpop.permute.xlu2 %2381  ;;  %3479 = vmatpush.msrb.mxu2 %v581_v9 }
 0x3ad   : > { %v2436_v46 = vsub.f32 %v5147_v62, %v2382_v44  ;;  %v1190_v62 = vsel %vm635_vm0, %v1174_v59, %v1189_v22  ;;  %v571_v59 = vld [vmem:[%s5343_s8 + $0x18] sm:$0xff]  ;;  %v578_v44 = vld [vmem:[%s5343_s8 + $0x50] sm:$0xff] }
 0x3ae   : > { %3034 = vmatpush.msrb.mxu1 %v1190_v62  ;;  %3480 = vmatpush.msrb.mxu2 %v580_v42  ;;  %v6164_v62 = vld [vmem:[#allocation7_spill] sm:$0xff] }
 0x3af   : > { %v2460_v13 = vmul.f32 1.442695, %v2436_v46  ;;  %v1305_v46 = vrot.slane %v5590_v61, 4  ;;  %v1194_v61 = vsel %vm635_vm0, %v5608_v41, %v1193_v1  ;;  %v6165_v41 = vld [vmem:[#allocation19_spill] sm:$0xff] }
 0x3b0   : > { %3364 = vmatpush.msra.mxu1 %v571_v59  ;;  %v6168_v59 = vld [vmem:[#allocation6_spill] sm:$0xff] }
 0x3b1   : > { %4350 = vpow2.f32 %v2460_v13  ;;  %v1306_v13 = vsel %vm635_vm0, %v5578_v3, %v1305_v46 }
 0x3b2   : > { %4320 = vset.pattern.permute.xlu2 %v5277_v33  ;;  %3365 = vmatpush.msra.mxu1 %v570_v34  ;;  %v595_v34 = vld [vmem:[%s5343_s8 + $0xd8] sm:$0xff] }
 0x3b3   : > { %3091 = vmatpush.msrb.mxu3 %v1306_v13 }
 0x3b5   : > { %3092 = vmatpush.msrb.mxu3 %v1194_v61  ;;  %v6174_v61 = vld [vmem:[#allocation17_spill] sm:$0xff] }
 0x3b7   : > { %v5656_v24 = vpop.eup %4350 }
 0x3b8   : > { %4215 = vmatmul.msk.f32.vlgmr.msrb.gmra.mxu0 %vm2054_vm2, %v5656_v24 }
 0x3b9   : > { %3433 = vmatpush.msrb.mxu0 %v577_v29 }
 0x3bb   : > { %3434 = vmatpush.msrb.mxu0 %v576_v16 }
 0x3bc   : > { %v2388_v2 = vpop.permute.xlu2 %2387 }
 0x3bd   : > { %v2437_v53 = vsub.f32 %v5161_v43, %v2388_v2 }
 0x3bf   : > { %v2462_v49 = vmul.f32 1.442695, %v2437_v53 }
 0x3c1   : > { %4352 = vpow2.f32 %v2462_v49 }
 0x3c2   : > { %4354 = vpow2.f32 %v2604_v11  ;;  %v2598_v11 = vsub.f32 %v6166_v19, %v6165_v41  ;;  %v598_v19 = vld [vmem:[%s5343_s8 + $0xf0] sm:$0xff] }
 0x3c3   : > { %4356 = vpow2.f32 %v2608_v4  ;;  %v6167_v4 = vld [vmem:[#allocation16_spill] sm:$0xff] }
 0x3c4   : > { %4358 = vpow2.f32 %v2612_v21  ;;  %v2624_v55 = vmul.f32 1.442695, %v2598_v11 }
 0x3c7   : > { %v4353_v57 = vpop.eup %4352 }
 0x3c8   : > { %4216 = vmatmul.msk.f32.gmra.mxu0 %vm2054_vm2, %v4353_v57  ;;  %v2663_v43 = vsel %vm2054_vm2, %v4353_v57, 0.0  ;;  %v4355_v35 = vpop.eup %4354 }
 0x3c9   : > { %2664 = vadd.xlane.f32.xlu1 %v2663_v43  ;;  %v5681_v7 = vpop.eup %4356 }
 0x3ca   : > { %v4359_v14 = vpop.eup %4358  ;;  %v2770_v23 = vsel %vm2054_vm2, %v5681_v7, 0.0 }
 0x3cc   : > { %v2395_v39 = vpop.permute.xlu2 %2394 }
 0x3cd   : > { %v2438_v6 = vsub.f32 %v5145_v27, %v2395_v39  ;;  %v2764_v27 = vsel %vm2054_vm2, %v4355_v35, 0.0  ;;  %v586_v39 = vld [vmem:[%s5343_s8 + $0x90] sm:$0xff] }
 0x3cf   : > { %v2464_v36 = vmul.f32 1.442695, %v2438_v6 }
 0x3d0   : > { %4223 = vmatmul.msk.f32.vlgmr.msra.gmra.mxu0 %vm2054_vm2, %v4355_v35 }
 0x3d1   : > { %4360 = vpow2.f32 %v2464_v36  ;;  %2673 = vadd.xlane.f32.xlu1 %v2672_v26  ;;  %3525 = vmatpush.msra.mxu0 %v585_v37  ;;  %v589_v36 = vld [vmem:[%s5343_s8 + $0xa8] sm:$0xff]  ;;  %v575_v26 = vld [vmem:[%s5343_s8 + $0x38] sm:$0xff] }
 0x3d2   : > { %4362 = vpow2.f32 %v2620_v31  ;;  %3410 = vmatpush.msra.mxu3 %v575_v26  ;;  %v588_v31 = vld [vmem:[%s5343_s8 + $0xa0] sm:$0xff] }
 0x3d3   : > { %2765 = vadd.xlane.f32.xlu2 %v2764_v27  ;;  %3526 = vmatpush.msra.mxu0 %v584_v56  ;;  %4364 = vpow2.f32 %v2628_v47  ;;  %v6169_v27 = vld [vmem:[#allocation18_spill] sm:$0xff]  ;;  %v2642_v47 = vsel %vm2054_vm2, %v5529_v40, 0.0  ;;  %v2651_v40 = vsel %vm2054_vm2, %v5636_v32, 0.0 }
 0x3d4   : > { %4366 = vpow2.f32 %v2616_v52 }
 0x3d7   : > { %v4361_v15 = vpop.eup %4360 }
 0x3d8   : > { %4217 = vmatmul.msk.f32.vlgmr.msrb.gmra.mxu1 %vm2054_vm2, %v4361_v15  ;;  %4227 = vmatmul.msk.f32.vlgmr.msrb.gmra.mxu0 %vm2054_vm2, %v4359_v14  ;;  %v2666_v63 = vsel %vm2054_vm2, %v4361_v15, 0.0  ;;  %v4363_v29 = vpop.eup %4362  ;;  %v2601_v15 = vsub.f32 %v6170_v20, %v5614_v51  ;;  %v6172_v51 = vld [vmem:[#allocation21_spill] sm:$0xff] }
 0x3d9   : > { %2667 = vadd.xlane.f32.xlu0 %v2666_v63  ;;  %3617 = vmatpush.msrb.mxu0 %v593_v5  ;;  %v5709_v50 = vpop.eup %4364  ;;  %v2788_v6 = vsel %vm2054_vm2, %v4363_v29, 0.0  ;;  %v594_v5 = vld [vmem:[%s5343_s8 + $0xd0] sm:$0xff]  ;;  %v583_v63 = vld [vmem:[%s5343_s8 + $0x78] sm:$0xff] }
 0x3da   : > { %3456 = vmatpush.msrb.mxu1 %v579_v30  ;;  %v4367_v2 = vpop.eup %4366  ;;  %v597_v30 = vld [vmem:[%s5343_s8 + $0xe8] sm:$0xff]  ;;  %v2800_v32 = vsel %vm2054_vm2, %v5709_v50, 0.0 }
 0x3db   : > { %2771 = vadd.xlane.f32.xlu2 %v2770_v23  ;;  %3618 = vmatpush.msrb.mxu0 %v592_v12  ;;  %v2782_v57 = vsel %vm2054_vm2, %v4367_v2, 0.0  ;;  %v6171_v12 = vld [vmem:[#allocation13_spill] sm:$0xff]  ;;  %v582_v23 = vld [vmem:[%s5343_s8 + $0x70] sm:$0xff] }
 0x3dc   : > { %v2401_v17 = vpop.permute.xlu2 %2400  ;;  %3457 = vmatpush.msrb.mxu1 %v578_v44  ;;  %v2602_v28 = vsub.f32 %v6171_v12, %v5595_v58  ;;  %v596_v44 = vld [vmem:[%s5343_s8 + $0xe0] sm:$0xff]  ;;  %v6173_v58 = vld [vmem:[#allocation8_spill] sm:$0xff] }
 0x3dd   : > { %v2439_v48 = vsub.f32 %v5165_v54, %v2401_v17  ;;  %v2776_v54 = vsel %vm2054_vm2, %v4359_v14, 0.0  ;;  %v574_v14 = vld [vmem:[%s5343_s8 + $0x30] sm:$0xff] }
 0x3de   : > { %3411 = vmatpush.msra.mxu3 %v574_v14  ;;  %v2632_v52 = vmul.f32 1.442695, %v2602_v28 }
 0x3df   : > { %v2466_v22 = vmul.f32 1.442695, %v2439_v48 }
 0x3e0   : > { %4231 = vmatmul.msk.f32.vlgmr.msra.gmra.mxu0 %vm2054_vm2, %v4363_v29  ;;  %v2660_v29 = vsel %vm2054_vm2, %v5656_v24, 0.0 }
 0x3e1   : > { %4368 = vpow2.f32 %v2466_v22  ;;  %v591_v22 = vld [vmem:[%s5343_s8 + $0xb8] sm:$0xff] }
 0x3e3   : > { %2777 = vadd.xlane.f32.xlu2 %v2776_v54  ;;  %v590_v54 = vld [vmem:[%s5343_s8 + $0xb0] sm:$0xff] }
 0x3e4   : > { %v2414_v3 = vpop.permute.xlu2 %2413 }
 0x3e5   : > { %v2441_v16 = vsub.f32 %v6164_v62, %v2414_v3  ;;  %v6175_v3 = vld [vmem:[#allocation9_spill] sm:$0xff] }
 0x3e6   : > { %v2599_v62 = vsub.f32 %v6175_v3, %v5587_v0 }
 0x3e7   : > { %v5712_v53 = vpop.eup %4368  ;;  %v2470_v49 = vmul.f32 1.442695, %v2441_v16 }
 0x3e8   : > { %4218 = vmatmul.msk.f32.gmra.mxu1 %vm2054_vm2, %v5712_v53  ;;  %4235 = vmatmul.msk.f32.vlgmr.msrb.gmra.mxu0 %vm2054_vm2, %v5709_v50  ;;  %v2669_v16 = vsel %vm2054_vm2, %v5712_v53, 0.0  ;;  %v2626_v24 = vmul.f32 1.442695, %v2599_v62  ;;  %v6177_v50 = vld [vmem:[#allocation10_spill] sm:$0xff] }
 0x3e9   : > { %4370 = vpow2.f32 %v2470_v49  ;;  %v6176_v49 = vld [vmem:[#allocation20_spill] sm:$0xff]  ;;  %v2603_v11 = vsub.f32 %v6177_v50, %v5489_v25 }
 0x3ea   : > { %4372 = vpow2.f32 %v2624_v55 }
 0x3eb   : > { %2783 = vadd.xlane.f32.xlu2 %v2782_v57  ;;  %v2634_v53 = vmul.f32 1.442695, %v2603_v11 }
 0x3ed   : > { %v5822_v62 = vpop.f32.mrf.mxu1 }
 0x3ef   : > { %v4371_v43 = vpop.eup %4370 }
 0x3f0   : > { %4220 = vmatmul.msk.f32.gmra.mxu2 %vm2054_vm2, %v4371_v43  ;;  %4224 = vmatmul.msk.f32.vlgmr.msra.gmra.mxu1 %vm2054_vm2, %v6167_v4  ;;  %v2675_v21 = vsel %vm2054_vm2, %v4371_v43, 0.0  ;;  %v4373_v56 = vpop.eup %4372  ;;  %v2769_v43 = vpop.xlane.xlu1 %2768 }
 0x3f1   : > { %2676 = vadd.xlane.f32.xlu0 %v2675_v21  ;;  %3548 = vmatpush.msra.mxu1 %v587_v8  ;;  %v2794_v60 = vsel %vm2054_vm2, %v4373_v56, 0.0 }
 0x3f3   : > { %2789 = vadd.xlane.f32.xlu2 %v2788_v6  ;;  %3549 = vmatpush.msra.mxu1 %v586_v39  ;;  %v6178_v39 = vld [vmem:[#allocation14_spill] sm:$0xff] }
 0x3f4   : > { %v2421_v37 = vpop.permute.xlu2 %2420  ;;  %v2829_v6 = vperm.slane %v2769_v43, %v6178_v39 }
 0x3f5   : > { %v2442_v35 = vsub.f32 %v6168_v59, %v2421_v37 }
 0x3f7   : > { %v2472_v18 = vmul.f32 1.442695, %v2442_v35 }
 0x3f8   : > { %4225 = vmatmul.msk.f32.vlgmr.msra.gmra.mxu2 %vm2054_vm2, %v5681_v7  ;;  %4228 = vmatmul.msk.f32.vlgmr.msrb.gmra.mxu1 %vm2054_vm2, %v6169_v27  ;;  %v2630_v7 = vmul.f32 1.442695, %v2601_v15  ;;  %v2775_v4 = vpop.xlane.xlu1 %2774 }
 0x3f9   : > { %4374 = vpow2.f32 %v2472_v18  ;;  %3571 = vmatpush.msra.mxu2 %v589_v36  ;;  %3640 = vmatpush.msrb.mxu1 %v595_v34  ;;  %v2831_v26 = vperm.slane %v2775_v4, %v6178_v39 }
 0x3fa   : > { %4376 = vpow2.f32 %v2630_v7 }
 0x3fb   : > { %2795 = vadd.xlane.f32.xlu2 %v2794_v60  ;;  %3572 = vmatpush.msra.mxu2 %v588_v31  ;;  %4378 = vpow2.f32 %v2632_v52  ;;  %v5796_v31 = vpop.f32.mrf.mxu0 }
 0x3fc   : > { %3641 = vmatpush.msrb.mxu1 %v594_v5 }
 0x3ff   : > { %v4375_v10 = vpop.eup %4374 }
 0x400   : > { %4221 = vmatmul.msk.f32.vlgmr.msrb.gmra.mxu3 %vm2054_vm2, %v4375_v10  ;;  %4229 = vmatmul.msk.f32.vlgmr.msrb.gmra.mxu2 %vm2054_vm2, %v4367_v2  ;;  %v4377_v13 = vpop.eup %4376  ;;  %v599_v2 = vld [vmem:[%s5343_s8 + $0xf8] sm:$0xff]  ;;  %v2678_v0 = vsel %vm2054_vm2, %v4375_v10, 0.0  ;;  %v2781_v36 = vpop.xlane.xlu1 %2780 }
 0x401   : > { %4232 = vmatmul.msk.f32.vlgmr.msra.gmra.mxu1 %vm2054_vm2, %v6172_v51  ;;  %3663 = vmatpush.msrb.mxu2 %v597_v30  ;;  %v4379_v9 = vpop.eup %4378  ;;  %v2803_v55 = vsel %vm2054_vm2, %v4377_v13, 0.0  ;;  %v2833_v20 = vperm.slane %v2781_v36, %v6178_v39 }
 0x402   : > { %3502 = vmatpush.msrb.mxu3 %v583_v63  ;;  %v2806_v41 = vsel %vm2054_vm2, %v4379_v9, 0.0 }
 0x403   : > { %2643 = vadd.xlane.f32.xlu2 %v2642_v47  ;;  %3664 = vmatpush.msrb.mxu2 %v596_v44  ;;  %v2894_v10 = vpop.f32.mrf.mxu0 }
 0x404   : > { %v2427_v17 = vpop.permute.xlu2 %2426  ;;  %3503 = vmatpush.msrb.mxu3 %v582_v23  ;;  %v3214_v50 = vrot.slane %v2894_v10, 4 }
 0x405   : > { %v2443_v46 = vsub.f32 %v6173_v58, %v2427_v17 }
 0x407   : > { %v2474_v48 = vmul.f32 1.442695, %v2443_v46 }
 0x408   : > { %4233 = vmatmul.msk.f32.vlgmr.msra.gmra.mxu2 %vm2054_vm2, %v4373_v56  ;;  %v2787_v15 = vpop.xlane.xlu1 %2786 }
 0x409   : > { %4380 = vpow2.f32 %v2474_v48  ;;  %4236 = vmatmul.msk.f32.vlgmr.msrb.gmra.mxu1 %vm2054_vm2, %v4377_v13  ;;  %v2835_v12 = vperm.slane %v2787_v15, %v6178_v39 }
 0x40a   : > { %4382 = vpow2.f32 %v2626_v24 }
 0x40b   : > { %2652 = vadd.xlane.f32.xlu2 %v2651_v40  ;;  %4384 = vpow2.f32 %v2634_v53 }
 0x40f   : > { %v4381_v1 = vpop.eup %4380 }
 0x410   : > { %4222 = vmatmul.msk.f32.gmra.mxu3 %vm2054_vm2, %v4381_v1  ;;  %4237 = vmatmul.msk.f32.vlgmr.msrb.gmra.mxu2 %vm2054_vm2, %v4379_v9  ;;  %v2681_v42 = vsel %vm2054_vm2, %v4381_v1, 0.0  ;;  %v5782_v57 = vpop.eup %4382  ;;  %v2793_v28 = vpop.xlane.xlu1 %2792 }
 0x411   : > { %2682 = vadd.xlane.f32.xlu1 %v2681_v42  ;;  %v4385_v8 = vpop.eup %4384  ;;  %v2837_v52 = vperm.slane %v2793_v28, %v6178_v39  ;;  %v2641_v9 = vpop.xlane.xlu0 %2640 }
 0x412   : > { %v2809_v25 = vsel %vm2054_vm2, %v4385_v8, 0.0 }
 0x413   : > { %2661 = vadd.xlane.f32.xlu2 %v2660_v29  ;;  %v5798_v14 = vpop.f32.mrf.mxu2 }
 0x418   : > { %4226 = vmatmul.msk.f32.vlgmr.msra.gmra.mxu3 %vm2054_vm2, %v6174_v61  ;;  %v2638_v46 = vpop.xlane.xlu1 %2637 }
 0x419   : > { %2801 = vadd.xlane.f32.xlu1 %v2800_v32  ;;  %3594 = vmatpush.msra.mxu3 %v591_v22 }
 0x41b   : > { %2670 = vadd.xlane.f32.xlu2 %v2669_v16  ;;  %3595 = vmatpush.msra.mxu3 %v590_v54  ;;  %v2952_v44 = vpop.f32.mrf.mxu2  ;;  %v2650_v16 = vpop.xlane.xlu0 %2649 }
 0x41c   : > { %v2706_v15 = vperm.slane %v2650_v16, %v6178_v39 }
 0x420   : > { %4230 = vmatmul.msk.f32.vlgmr.msrb.gmra.mxu3 %vm2054_vm2, %v6176_v49  ;;  %v2647_v29 = vpop.xlane.xlu1 %2646 }
 0x421   : > { %2807 = vadd.xlane.f32.xlu1 %v2806_v41  ;;  %3686 = vmatpush.msrb.mxu3 %v599_v2  ;;  %v5824_v2 = vpop.f32.mrf.mxu3  ;;  %v2923_v41 = vpop.f32.mrf.mxu1 }
 0x422   : > { %v3226_v53 = vrot.slane %v2923_v41, 4 }
 0x423   : > { %2679 = vadd.xlane.f32.xlu2 %v2678_v0  ;;  %3687 = vmatpush.msrb.mxu3 %v598_v19  ;;  %v5815_v13 = vpop.f32.mrf.mxu2  ;;  %v2659_v19 = vpop.xlane.xlu0 %2658 }
 0x428   : > { %4234 = vmatmul.msk.f32.vlgmr.msra.gmra.mxu3 %vm2054_vm2, %v5782_v57  ;;  %v2656_v24 = vpop.xlane.xlu1 %2655 }
 0x42b   : > { %2804 = vadd.xlane.f32.xlu2 %v2803_v55  ;;  %v2981_v11 = vpop.f32.mrf.mxu3  ;;  %v3215_v55 = vsel %vm635_vm0, %v2952_v44, %v3214_v50 }
 0x42c   : > { %v3223_v43 = vperm.slane %v3215_v55, %v4633_v38  ;;  %v3224_v4 = vrot.slane %v2981_v11, 4 }
 0x430   : > { %4238 = vmatmul.msk.f32.vlgmr.msrb.gmra.mxu3 %vm2054_vm2, %v4385_v8  ;;  %v3212_v8 = vrot.slane %v2952_v44, 4 }
 0x433   : > { %2810 = vadd.xlane.f32.xlu2 %v2809_v25  ;;  %v3227_v25 = vsel %vm635_vm0, %v2981_v11, %v3226_v53 }
 0x435   : > { %v5811_v17 = vpop.f32.mrf.mxu0 }
 0x43c   : > { %v2665_v0 = vpop.xlane.xlu1 %2664 }
 0x445   : > { %v3010_v1 = vpop.f32.mrf.mxu0 }
 0x446   : > { %v2766_v21 = vpop.xlane.xlu2 %2765  ;;  %v3238_v61 = vrot.slane %v3010_v1, 4 }
 0x447   : > { %v2828_v37 = vperm.slane %v2766_v21, %v6178_v39 }
 0x449   : > { %v2844_v59 = vsel %vm2147_vm4, %v2829_v6, %v2828_v37  ;;  %v3213_v6 = vsel %vm635_vm0, %v3212_v8, %v2894_v10  ;;  %v3235_v37 = vperm.slane %v3227_v25, %v4633_v38 }
 0x44b   : > { %v3272_v28 = vrot.slane %v3235_v37, 4 }
 0x44e   : > { %v2772_v35 = vpop.xlane.xlu2 %2771 }
 0x44f   : > { %v2830_v34 = vperm.slane %v2772_v35, %v6178_v39 }
 0x451   : > { %v2845_v56 = vsel %vm2149_vm5, %v2830_v34, %v2844_v59  ;;  %v2668_v59 = vpop.xlane.xlu0 %2667  ;;  %v3274_v34 = vrot.slane %v3223_v43, 4 }
 0x452   : > { %v2846_v18 = vsel %vm2151_vm6, %v2831_v26, %v2845_v56  ;;  %v3225_v26 = vsel %vm635_vm0, %v3224_v4, %v2923_v41  ;;  %v6179_v56 = vld [vmem:[#allocation15_spill] sm:$0xff]  ;;  %v2715_v41 = vperm.slane %v2668_v59, %v6178_v39 }
 0x453   : > { %v3275_v10 = vsel %vm635_vm0, %v3235_v37, %v3274_v34 }
 0x455   : > { %v5831_v35 = vpop.f32.mrf.mxu1 }
 0x456   : > { %v2778_v27 = vpop.xlane.xlu2 %2777 }
 0x457   : > { %v2832_v5 = vperm.slane %v2778_v27, %v6178_v39  ;;  %v2701_v27 = vperm.slane %v2641_v9, %v6179_v56 }
 0x459   : > { %v2847_v60 = vsel %vm2153_vm7, %v2832_v5, %v2846_v18  ;;  %v2704_v5 = vperm.slane %v2647_v29, %v6179_v56 }
 0x45a   : > { %v2848_v7 = vsel %vm2155_vm8, %v2833_v20, %v2847_v60  ;;  %v3219_v20 = vperm.slane %v3213_v6, %v4633_v38  ;;  %v2674_v60 = vpop.xlane.xlu1 %2673 }
 0x45e   : > { %v2784_v30 = vpop.xlane.xlu2 %2783 }
 0x45f   : > { %v2834_v63 = vperm.slane %v2784_v30, %v6178_v39 }
 0x461   : > { %v2849_v51 = vsel %vm2157_vm9, %v2834_v63, %v2848_v7  ;;  %v2700_v63 = vperm.slane %v2638_v46, %v6178_v39  ;;  %v2713_v46 = vperm.slane %v2665_v0, %v6179_v56 }
 0x462   : > { %v5808_v23 = vsel %vm2159_vm10, %v2835_v12, %v2849_v51  ;;  %v3231_v12 = vperm.slane %v3225_v26, %v4633_v38  ;;  %v2710_v51 = vperm.slane %v2659_v19, %v6179_v56 }
 0x464   : > { %v2677_v29 = vpop.xlane.xlu0 %2676  ;;  %v3260_v11 = vrot.slane %v3231_v12, 4 }
 0x466   : > { %v2790_v47 = vpop.xlane.xlu2 %2789 }
 0x467   : > { %v2836_v58 = vperm.slane %v2790_v47, %v6178_v39 }
 0x469   : > { %v2851_v48 = vsel %vm2147_vm4, %v2837_v52, %v2836_v58  ;;  %v2702_v58 = vsel %vm2124_vm3, %v2701_v27, %v2700_v63 }
 0x46e   : > { %v2796_v40 = vpop.xlane.xlu2 %2795 }
 0x46f   : > { %v2838_v42 = vperm.slane %v2796_v40, %v6178_v39  ;;  %v3262_v40 = vrot.slane %v3219_v20, 4 }
 0x471   : > { %v5819_v22 = vsel %vm2149_vm5, %v2838_v42, %v2851_v48  ;;  %v2709_v48 = vperm.slane %v2656_v24, %v6178_v39  ;;  %v3283_v42 = vperm.slane %v3275_v10, %v4651_v45  ;;  %v3263_v19 = vsel %vm635_vm0, %v3231_v12, %v3262_v40 }
 0x472   : > { %v3271_v6 = vperm.slane %v3263_v19, %v4651_v45 }
 0x473   : > { %v3068_v32 = vpop.f32.mrf.mxu2  ;;  %v2711_v50 = vsel %vm2124_vm3, %v2710_v51, %v2709_v48  ;;  %v3322_v37 = vrot.slane %v3283_v42, 4 }
 0x474   : > { %v3239_v54 = vsel %vm635_vm0, %v3068_v32, %v3238_v61  ;;  %v3236_v7 = vrot.slane %v3068_v32, 4  ;;  %v3039_v61 = vpop.f32.mrf.mxu1 }
 0x475   : > { %v3247_v0 = vperm.slane %v3239_v54, %v4633_v38  ;;  %v3250_v55 = vrot.slane %v3039_v61, 4  ;;  %v2718_v54 = vperm.slane %v2674_v60, %v6178_v39 }
 0x476   : > { %v2644_v3 = vpop.xlane.xlu2 %2643  ;;  %v3237_v32 = vsel %vm635_vm0, %v3236_v7, %v3010_v1  ;;  %v2719_v1 = vperm.slane %v2677_v29, %v6179_v56 }
 0x477   : > { %v2703_v36 = vperm.slane %v2644_v3, %v6178_v39  ;;  %v3243_v8 = vperm.slane %v3237_v32, %v4633_v38 }
 0x478   : > { %v2720_v7 = vsel %vm2124_vm3, %v2719_v1, %v2718_v54 }
 0x479   : > { %v2705_v44 = vsel %vm2124_vm3, %v2704_v5, %v2703_v36  ;;  %v3286_v10 = vrot.slane %v3243_v8, 4 }
 0x47a   : > { %v2724_v3 = vsel %vm2147_vm4, %v2705_v44, %v2702_v58 }
 0x47e   : > { %v2653_v49 = vpop.xlane.xlu2 %2652 }
 0x47f   : > { %v2707_v18 = vperm.slane %v2653_v49, %v6179_v56  ;;  %v3273_v49 = vsel %vm635_vm0, %v3272_v28, %v3223_v43 }
 0x480   : > { %v3279_v59 = vperm.slane %v3273_v49, %v4651_v45 }
 0x481   : > { %v2708_v47 = vsel %vm2124_vm3, %v2707_v18, %v2706_v15  ;;  %v3298_v18 = vrot.slane %v3247_v0, 4  ;;  %v3261_v15 = vsel %vm635_vm0, %v3260_v11, %v3219_v20  ;;  %v3314_v20 = vrot.slane %v3271_v6, 4 }
 0x482   : > { %v2725_v24 = vsel %vm2149_vm5, %v2708_v47, %v2724_v3  ;;  %v3267_v48 = vperm.slane %v3261_v15, %v4651_v45 }
 0x483   : > { %v5840_v30 = vpop.f32.mrf.mxu3  ;;  %v2726_v4 = vsel %vm2151_vm6, %v2711_v50, %v2725_v24 }
 0x484   : > { %v2683_v43 = vpop.xlane.xlu1 %2682  ;;  %v3310_v11 = vrot.slane %v3267_v48, 4 }
 0x485   : > { %v2722_v63 = vperm.slane %v2683_v43, %v6179_v56 }
 0x486   : > { %v2662_v21 = vpop.xlane.xlu2 %2661 }
 0x487   : > { %v2712_v52 = vperm.slane %v2662_v21, %v6178_v39 }
 0x489   : > { %v2714_v53 = vsel %vm2124_vm3, %v2713_v46, %v2712_v52 }
 0x48a   : > { %v2727_v36 = vsel %vm2153_vm7, %v2714_v53, %v2726_v4  ;;  %v2797_v4 = vsel %vm2054_vm2, %v5782_v57, 0.0 }
 0x48c   : > { %v2802_v15 = vpop.xlane.xlu1 %2801 }
 0x48e   : > { %v2671_v9 = vpop.xlane.xlu2 %2670 }
 0x48f   : > { %v2716_v16 = vperm.slane %v2671_v9, %v6179_v56 }
 0x491   : > { %v2717_v25 = vsel %vm2124_vm3, %v2716_v16, %v2715_v41  ;;  %v3318_v41 = vrot.slane %v3279_v59, 4 }
 0x492   : > { %v2728_v27 = vsel %vm2155_vm8, %v2717_v25, %v2727_v36 }
 0x493   : > { %v3097_v21 = vpop.f32.mrf.mxu3  ;;  %v2729_v58 = vsel %vm2157_vm9, %v2720_v7, %v2728_v27 }
 0x494   : > { %v3248_v34 = vrot.slane %v3097_v21, 4  ;;  %v3251_v26 = vsel %vm635_vm0, %v3097_v21, %v3250_v55 }
 0x495   : > { %v3259_v5 = vperm.slane %v3251_v26, %v4633_v38 }
 0x496   : > { %v3249_v12 = vsel %vm635_vm0, %v3248_v34, %v3039_v61  ;;  %v2680_v60 = vpop.xlane.xlu2 %2679 }
 0x497   : > { %v3255_v28 = vperm.slane %v3249_v12, %v4633_v38  ;;  %v3296_v44 = vrot.slane %v3259_v5, 4  ;;  %v3299_v51 = vsel %vm635_vm0, %v3259_v5, %v3298_v18  ;;  %v2721_v47 = vperm.slane %v2680_v60, %v6178_v39 }
 0x498   : > { %v3307_v52 = vperm.slane %v3299_v51, %v4651_v45  ;;  %v2840_v60 = vperm.slane %v2802_v15, %v6178_v39 }
 0x499   : > { %v3284_v40 = vrot.slane %v3255_v28, 4  ;;  %v2723_v56 = vsel %vm2124_vm3, %v2722_v63, %v2721_v47  ;;  %v3287_v9 = vsel %vm635_vm0, %v3255_v28, %v3286_v10  ;;  %v3297_v46 = vsel %vm635_vm0, %v3296_v44, %v3247_v0  ;;  %v2808_v63 = vpop.xlane.xlu1 %2807 }
 0x49a   : > { %v3320_v29 = vrot.slane %v3307_v52, 4  ;;  %v2730_v61 = vsel %vm2159_vm10, %v2723_v56, %v2729_v58  ;;  %v3295_v32 = vperm.slane %v3287_v9, %v4651_v45  ;;  %v5890_v3 = vsel %vm635_vm0, %v3307_v52, %v3322_v37 }
 0x49b   : > { %2732 = vxpose.xlu0.b32.start.end [1/1] (short) (narrow) %v2730_v61, 16  ;;  %v3285_v16 = vsel %vm635_vm0, %v3284_v40, %v3243_v8  ;;  %v3303_v49 = vperm.slane %v3297_v46, %v4651_v45  ;;  %v3112_v47 = vrot.slane %v5824_v2, 4  ;;  %v2842_v52 = vperm.slane %v2808_v63, %v6178_v39 }
 0x49c   : > { %v5895_v24 = vsel %vm635_vm0, %v3320_v29, %v3283_v42  ;;  %v5898_v19 = vsel %vm635_vm0, %v3295_v32, %v3314_v20  ;;  %v3291_v50 = vperm.slane %v3285_v16, %v4651_v45  ;;  %v3312_v53 = vrot.slane %v3295_v32, 4 }
 0x49d   : > { %v5902_v0 = vsel %vm635_vm0, %v3303_v49, %v3318_v41  ;;  %v3316_v1 = vrot.slane %v3303_v49, 4  ;;  %v3136_v40 = vrot.slane %v5840_v30, 4  ;;  %v3113_v46 = vsel %vm635_vm0, %v3112_v47, %v5822_v62 }
 0x49e   : > { %v5905_v55 = vsel %vm635_vm0, %v3291_v50, %v3310_v11  ;;  %v3308_v8 = vrot.slane %v3291_v50, 4  ;;  %v5908_v25 = vsel %vm635_vm0, %v3312_v53, %v3271_v6  ;;  %v2865_v6 = vstv %s5919_s20  ;;  %v2805_v7 = vpop.xlane.xlu2 %2804 }
 0x49f   : > { %v5911_v42 = vsel %vm635_vm0, %v3316_v1, %v3279_v59  ;;  %v2841_v44 = vperm.slane %v2805_v7, %v6178_v39  ;;  %v3100_v29 = vrot.slane %v5798_v14, 4  ;;  %v3137_v61 = vsel %vm635_vm0, %v3136_v40, %v5831_v35 }
 0x4a0   : > { %v5914_v43 = vsel %vm635_vm0, %v3308_v8, %v3267_v48  ;;  %v3143_v32 = vperm.slane %v3137_v61, %v4633_v38  ;;  %v3124_v49 = vrot.slane %v5815_v13, 4 }
 0x4a1   : > { %v3101_v16 = vsel %vm635_vm0, %v3100_v29, %v5796_v31 }
 0x4a2   : > { %v3125_v11 = vsel %vm635_vm0, %v3124_v49, %v5811_v17  ;;  %v3107_v53 = vperm.slane %v3101_v16, %v4633_v38  ;;  %v3172_v1 = vrot.slane %v3143_v32, 4 }
 0x4a6   : > { %v2811_v28 = vpop.xlane.xlu2 %2810 }
 0x4a7   : > { %v2843_v20 = vperm.slane %v2811_v28, %v6178_v39 }
 0x502   : > { %4321 = vset.pattern.permute.xlu0 %v5277_v33 }
 0x514   : > { %2798 = vadd.xlane.f32.xlu0 %v2797_v4  ;;  %v3131_v4 = vperm.slane %v3125_v11, %v4633_v38 }
 0x53f   : > { %v2748_v21 = vpop.trf.xlu0 }
 0x540   : > { %v2860_v37 = vadd.f32 %v5808_v23, %v2748_v21 }
 0x542   : > { %4386 = vrcp.f32 %v2860_v37 }
 0x547   : > { %v2749_v23 = vpop.trf.xlu0 }
 0x548   : > { %v4387_v54 = vpop.eup %4386 }
 0x549   : > { %v2866_v59 = vmul.f32 %v4387_v54, %v2865_v6 }
 0x54b   : > { %v3731_v36 = vperm.slane %v2866_v59, 1  ;;  %v3724_v34 = vperm.slane %v2866_v59, 0  ;;  %v3745_v26 = vperm.slane %v2866_v59, 3  ;;  %v3738_v33 = vperm.slane %v2866_v59, 2 }
 0x54c   : > { %v3759_v57 = vperm.slane %v2866_v59, 5  ;;  %v3752_v18 = vperm.slane %v2866_v59, 4  ;;  %v3773_v27 = vperm.slane %v2866_v59, 7  ;;  %v3766_v5 = vperm.slane %v2866_v59, 6 }
 0x54d   : > { %3736 = vperm.xlu2 %4320, %v3731_v36   ;;  %3729 = vperm.xlu1 %4305, %v3724_v34   ;;  %v3114_v59 = vrot.slane %v5822_v62, 4  ;;  %v3173_v36 = vsel %vm635_vm0, %v3172_v1, %v3131_v4 }
 0x555   : > { %3750 = vperm.xlu2 %4320, %v3745_v26   ;;  %3743 = vperm.xlu1 %4305, %v3738_v33   ;;  %v3138_v26 = vrot.slane %v5831_v35, 4  ;;  %v5964_v33 = vperm.slane %v3173_v36, %v4651_v45 }
 0x557   : > { %v3139_v62 = vsel %vm635_vm0, %v5840_v30, %v3138_v26 }
 0x558   : > { %v3147_v30 = vperm.slane %v3139_v62, %v4633_v38  ;;  %v3697_v62 = vld [vmem:[%s5988_s21 + $0x28] sm:$0xff] }
 0x55d   : > { %3764 = vperm.xlu2 %4320, %v3759_v57   ;;  %3757 = vperm.xlu1 %4305, %v3752_v18  }
 0x565   : > { %3778 = vperm.xlu2 %4320, %v3773_v27   ;;  %3771 = vperm.xlu1 %4305, %v3766_v5   ;;  %v3102_v27 = vrot.slane %v5796_v31, 4  ;;  %v3150_v5 = vrot.slane %v3107_v53, 4 }
 0x567   : > { %v3103_v7 = vsel %vm635_vm0, %v5798_v14, %v3102_v27 }
 0x587   : > { %v2799_v10 = vpop.xlane.xlu0 %2798 }
 0x588   : > { %v2839_v12 = vperm.slane %v2799_v10, %v6178_v39  ;;  %v3119_v39 = vperm.slane %v3113_v46, %v4633_v38  ;;  %v3174_v10 = vrot.slane %v3131_v4, 4 }
 0x58a   : > { %v2853_v51 = vsel %vm2151_vm6, %v2839_v12, %v5819_v22  ;;  %v3148_v41 = vrot.slane %v3119_v39, 4  ;;  %v3151_v63 = vsel %vm635_vm0, %v3119_v39, %v3150_v5  ;;  %v3367_v12 = vpop.f32.mrf.mxu1 }
 0x58b   : > { %v2854_v58 = vsel %vm2153_vm7, %v2840_v60, %v2853_v51  ;;  %v3175_v60 = vsel %vm635_vm0, %v3143_v32, %v3174_v10  ;;  %v5985_v14 = vperm.slane %v3151_v63, %v4651_v45  ;;  %v3693_v51 = vld [vmem:[%s5988_s21 + $0x8] sm:$0xff]  ;;  %v3695_v32 = vld [vmem:[%s5988_s21 + $0x18] sm:$0xff] }
 0x58c   : > { %v2855_v48 = vsel %vm2155_vm8, %v2841_v44, %v2854_v58  ;;  %v3149_v54 = vsel %vm635_vm0, %v3148_v41, %v3107_v53 }
 0x58d   : > { %v2856_v56 = vsel %vm2157_vm9, %v2842_v52, %v2855_v48  ;;  %v5958_v34 = vperm.slane %v3149_v54, %v4651_v45  ;;  %v3184_v52 = vrot.slane %v3147_v30, 4  ;;  %v3183_v48 = vperm.slane %v3175_v60, %v4651_v45 }
 0x58e   : > { %v2857_v9 = vsel %vm2159_vm10, %v2843_v20, %v2856_v56  ;;  %v3202_v46 = vrot.slane %v5985_v14, 4 }
 0x58f   : > { %v2861_v22 = vadd.f32 %v2857_v9, %v2749_v23  ;;  %v3198_v18 = vrot.slane %v5958_v34, 4 }
 0x591   : > { %4388 = vrcp.f32 %v2861_v22  ;;  %v3199_v35 = vsel %vm635_vm0, %v5964_v33, %v3198_v18  ;;  %v3413_v22 = vpop.f32.mrf.mxu3  ;;  %v3196_v18 = vrot.slane %v5964_v33, 4  ;;  %v3699_v33 = vld [vmem:[%s5988_s21 + $0x38] sm:$0xff] }
 0x592   : > { %v3709_v28 = vadd.f32 %v3367_v12, %v3199_v35  ;;  %v3344_v35 = vpop.f32.mrf.mxu0  ;;  %v3200_v12 = vrot.slane %v3183_v48, 4 }
 0x597   : > { %v4389_v50 = vpop.eup %4388 }
 0x598   : > { %v5949_v8 = vmul.f32 %v4389_v50, %v2865_v6  ;;  %v3115_v6 = vsel %vm635_vm0, %v5824_v2, %v3114_v59  ;;  %v3126_v2 = vrot.slane %v5811_v17, 4  ;;  %v3111_v17 = vperm.slane %v3103_v7, %v4633_v38  ;;  %v3459_v59 = vpop.f32.mrf.mxu1 }
 0x599   : > { %v3123_v57 = vperm.slane %v3115_v6, %v4633_v38 }
 0x59a   : > { %v3787_v21 = vperm.slane %v5949_v8, 1  ;;  %v3780_v37 = vperm.slane %v5949_v8, 0  ;;  %v3801_v23 = vperm.slane %v5949_v8, 3  ;;  %v3794_v15 = vperm.slane %v5949_v8, 2 }
 0x59b   : > { %v3160_v31 = vrot.slane %v3123_v57, 4  ;;  %v3127_v44 = vsel %vm635_vm0, %v5815_v13, %v3126_v2  ;;  %v3815_v13 = vperm.slane %v5949_v8, 5  ;;  %v3808_v9 = vperm.slane %v5949_v8, 4 }
 0x59c   : > { %3792 = vperm.xlu2 %4320, %v3787_v21   ;;  %3785 = vperm.xlu1 %4305, %v3780_v37   ;;  %v3135_v40 = vperm.slane %v3127_v44, %v4633_v38  ;;  %v3203_v38 = vsel %vm635_vm0, %v3183_v48, %v3202_v46  ;;  %v3162_v11 = vrot.slane %v3111_v17, 4  ;;  %v3829_v1 = vperm.slane %v5949_v8, 7  ;;  %v3696_v46 = vld [vmem:[%s5988_s21 + $0x20] sm:$0xff] }
 0x59d   : > { %v3161_v20 = vsel %vm635_vm0, %v3160_v31, %v3111_v17  ;;  %v3711_v39 = vadd.f32 %v3413_v22, %v3203_v38  ;;  %v3822_v4 = vperm.slane %v5949_v8, 6  ;;  %v3197_v2 = vsel %vm635_vm0, %v3196_v18, %v5958_v34  ;;  %v3692_v31 = vld [vmem:[%s5988_s21] sm:$0xff]  ;;  %v3705_v18 = vld [vmem:[%s5988_s21 + $0x68] sm:$0xff] }
 0x59e   : > { %v3185_v29 = vsel %vm635_vm0, %v3184_v52, %v3135_v40  ;;  %v3167_v61 = vperm.slane %v3161_v20, %v4651_v45  ;;  %v3186_v37 = vrot.slane %v3135_v40, 4  ;;  %v3163_v54 = vsel %vm635_vm0, %v3123_v57, %v3162_v11  ;;  %v3694_v52 = vld [vmem:[%s5988_s21 + $0x10] sm:$0xff] }
 0x59f   : > { %v3191_v49 = vperm.slane %v3185_v29, %v4651_v45  ;;  %v3171_v26 = vperm.slane %v3163_v54, %v4651_v45  ;;  %v3201_v44 = vsel %vm635_vm0, %v3200_v12, %v5985_v14 }
 0x5a0   : > { %v3206_v50 = vrot.slane %v3167_v61, 4  ;;  %v3187_v36 = vsel %vm635_vm0, %v3147_v30, %v3186_v37  ;;  %v3708_v30 = vadd.f32 %v3344_v35, %v3197_v2  ;;  %v3551_v11 = vpop.f32.mrf.mxu1  ;;  %v3707_v35 = vld [vmem:[%s5988_s21 + $0x78] sm:$0xff] }
 0x5a1   : > { %v3195_v57 = vperm.slane %v3187_v36, %v4651_v45  ;;  %v3204_v20 = vrot.slane %v3191_v49, 4  ;;  %v3703_v36 = vld [vmem:[%s5988_s21 + $0x58] sm:$0xff] }
 0x5a2   : > { %v3207_v21 = vsel %vm635_vm0, %v3191_v49, %v3206_v50 }
 0x5a3   : > { %v3713_v6 = vadd.f32 %v3459_v59, %v3207_v21 }
 0x5a4   : > { %3806 = vperm.xlu2 %4320, %v3801_v23   ;;  %3799 = vperm.xlu1 %4305, %v3794_v15   ;;  %v3210_v23 = vrot.slane %v3171_v26, 4  ;;  %v3505_v15 = vpop.f32.mrf.mxu3 }
 0x5a6   : > { %v3211_v7 = vsel %vm635_vm0, %v3195_v57, %v3210_v23 }
 0x5a7   : > { %v3737_v47 = vpop.permute.xlu2 %3736  ;;  %v3715_v10 = vadd.f32 %v3505_v15, %v3211_v7 }
 0x5a8   : > { %v3837_v58 = vmul.f32 %v3737_v47, %v3709_v28 }
 0x5aa   : > { %v3853_v56 = vadd.f32 %v3837_v58, %v3693_v51  ;;  %v3390_v51 = vpop.f32.mrf.mxu2 }
 0x5ab   : > { %v3710_v47 = vadd.f32 %v3390_v51, %v3201_v44  ;;  %v3704_v44 = vld [vmem:[%s5988_s21 + $0x60] sm:$0xff] }
 0x5ac   : > { %3869 = vst.msk [vmem:[%s5998_s7 + $0x8] sm:$0xff] %vm1309_vm1, %v3853_v56  ;;  %3820 = vperm.xlu2 %4320, %v3815_v13   ;;  %3813 = vperm.xlu1 %4305, %v3808_v9   ;;  %v3205_v56 = vsel %vm635_vm0, %v3204_v20, %v3167_v61  ;;  %v3436_v13 = vpop.f32.mrf.mxu0  ;;  %v3208_v9 = vrot.slane %v3195_v57, 4  ;;  %v3698_v61 = vld [vmem:[%s5988_s21 + $0x30] sm:$0xff]  ;;  %v3597_v54 = vpop.f32.mrf.mxu3 }
 0x5ad   : > { %v3712_v14 = vadd.f32 %v3436_v13, %v3205_v56  ;;  %v3719_v59 = vadd.f32 %v3597_v54, %v5898_v19 }
 0x5af   : > { %v3751_v16 = vpop.permute.xlu2 %3750 }
 0x5b0   : > { %v3839_v41 = vmul.f32 %v3751_v16, %v3711_v39  ;;  %v3209_v39 = vsel %vm635_vm0, %v3208_v9, %v3171_v26 }
 0x5b2   : > { %v3855_v53 = vadd.f32 %v3839_v41, %v3695_v32  ;;  %v3482_v32 = vpop.f32.mrf.mxu2 }
 0x5b3   : > { %v3714_v16 = vadd.f32 %v3482_v32, %v3209_v39 }
 0x5b4   : > { %3871 = vst.msk [vmem:[%s5998_s7 + $0x18] sm:$0xff] %vm1309_vm1, %v3855_v53  ;;  %3834 = vperm.xlu2 %4320, %v3829_v1   ;;  %3827 = vperm.xlu1 %4305, %v3822_v4   ;;  %v3717_v53 = vadd.f32 %v3551_v11, %v5905_v55  ;;  %v3701_v1 = vld [vmem:[%s5988_s21 + $0x48] sm:$0xff]  ;;  %v3689_v23 = vpop.f32.mrf.mxu3  ;;  %v3528_v19 = vpop.f32.mrf.mxu0 }
 0x5b5   : > { %v3723_v15 = vadd.f32 %v3689_v23, %v5890_v3  ;;  %v3716_v2 = vadd.f32 %v3528_v19, %v5914_v43  ;;  %v3702_v43 = vld [vmem:[%s5988_s21 + $0x50] sm:$0xff] }
 0x5b7   : > { %v3765_v8 = vpop.permute.xlu2 %3764 }
 0x5b8   : > { %v3841_v27 = vmul.f32 %v3765_v8, %v3713_v6  ;;  %v3643_v8 = vpop.f32.mrf.mxu1 }
 0x5b9   : > { %v3721_v55 = vadd.f32 %v3643_v8, %v5902_v0 }
 0x5ba   : > { %v3857_v5 = vadd.f32 %v3841_v27, %v3697_v62 }
 0x5bc   : > { %3873 = vst.msk [vmem:[%s5998_s7 + $0x28] sm:$0xff] %vm1309_vm1, %v3857_v5 }
 0x5bf   : > { %v3779_v63 = vpop.permute.xlu2 %3778  ;;  %v3730_v45 = vpop.permute.xlu1 %3729 }
 0x5c0   : > { %v3843_v60 = vmul.f32 %v3779_v63, %v3715_v10  ;;  %v3836_v28 = vmul.f32 %v3730_v45, %v3708_v30  ;;  %v3700_v10 = vld [vmem:[%s5988_s21 + $0x40] sm:$0xff]  ;;  %v3574_v45 = vpop.f32.mrf.mxu2 }
 0x5c1   : > { %v3718_v3 = vadd.f32 %v3574_v45, %v5908_v25  ;;  %v3706_v25 = vld [vmem:[%s5988_s21 + $0x70] sm:$0xff] }
 0x5c2   : > { %v3859_v17 = vadd.f32 %v3843_v60, %v3699_v33  ;;  %v3852_v34 = vadd.f32 %v3836_v28, %v3692_v31 }
 0x5c4   : > { %3875 = vst.msk [vmem:[%s5998_s7 + $0x38] sm:$0xff] %vm1309_vm1, %v3859_v17  ;;  %v3620_v17 = vpop.f32.mrf.mxu0 }
 0x5c5   : > { %3868 = vst.msk [vmem:[%s5998_s7] sm:$0xff] %vm1309_vm1, %v3852_v34  ;;  %v3720_v34 = vadd.f32 %v3620_v17, %v5911_v42  ;;  %v3955_v42 = vld [vmem:[%s5998_s7 + $0x8] sm:$0xff] (%p4538_p6) }
 0x5c6   : > { %3956 = vst [vmem:[%s3894_s10 + $0x10] sm:$0xff] (%p4538_p6), %v3955_v42 }
 0x5c7   : > { %v3744_v58 = vpop.permute.xlu1 %3743 }
 0x5c8   : > { %v3838_v48 = vmul.f32 %v3744_v58, %v3710_v47  ;;  %v3666_v58 = vpop.f32.mrf.mxu2 }
 0x5c9   : > { %v3722_v20 = vadd.f32 %v3666_v58, %v5895_v24 }
 0x5ca   : > { %v3854_v40 = vadd.f32 %v3838_v48, %v3694_v52 }
 0x5cc   : > { %3870 = vst.msk [vmem:[%s5998_s7 + $0x10] sm:$0xff] %vm1309_vm1, %v3854_v40  ;;  %v3953_v24 = vld [vmem:[%s5998_s7] sm:$0xff] (%p4538_p6) }
 0x5cd   : > { %3954 = vst [vmem:[%s3894_s10] sm:$0xff] (%p4538_p6), %v3953_v24 }
 0x5cf   : > { %v3758_v22 = vpop.permute.xlu1 %3757 }
 0x5d0   : > { %v3840_v29 = vmul.f32 %v3758_v22, %v3712_v14  ;;  %v3959_v14 = vld [vmem:[%s5998_s7 + $0x18] sm:$0xff] (%p4538_p6) }
 0x5d1   : > { %3960 = vst [vmem:[%s3894_s10 + $0x30] sm:$0xff] (%p4538_p6), %v3959_v14 }
 0x5d2   : > { %v3856_v38 = vadd.f32 %v3840_v29, %v3696_v46  ;;  %v3963_v46 = vld [vmem:[%s5998_s7 + $0x28] sm:$0xff] (%p4538_p6)  ;;  %v3967_v29 = vld [vmem:[%s5998_s7 + $0x38] sm:$0xff] (%p4538_p6) }
 0x5d3   : > { %v3957_v13 = vld [vmem:[%s5998_s7 + $0x10] sm:$0xff] (%p4538_p6)  ;;  %3964 = vst [vmem:[%s3894_s10 + $0x50] sm:$0xff] (%p4538_p6), %v3963_v46 }
 0x5d4   : > { %3872 = vst.msk [vmem:[%s5998_s7 + $0x20] sm:$0xff] %vm1309_vm1, %v3856_v38 }
 0x5d5   : > { %3958 = vst [vmem:[%s3894_s10 + $0x20] sm:$0xff] (%p4538_p6), %v3957_v13 }
 0x5d6   : > { %3968 = vst [vmem:[%s3894_s10 + $0x70] sm:$0xff] (%p4538_p6), %v3967_v29 }
 0x5d7   : > { %v3772_v49 = vpop.permute.xlu1 %3771 }
 0x5d8   : > { %v3842_v41 = vmul.f32 %v3772_v49, %v3714_v16 }
 0x5da   : > { %v3858_v50 = vadd.f32 %v3842_v41, %v3698_v61 }
 0x5db   : > { %v3961_v9 = vld [vmem:[%s5998_s7 + $0x20] sm:$0xff] (%p4538_p6) }
 0x5dc   : > { %3874 = vst.msk [vmem:[%s5998_s7 + $0x30] sm:$0xff] %vm1309_vm1, %v3858_v50 }
 0x5dd   : > { %3962 = vst [vmem:[%s3894_s10 + $0x40] sm:$0xff] (%p4538_p6), %v3961_v9 }
 0x5e3   : > { %v3965_v22 = vld [vmem:[%s5998_s7 + $0x30] sm:$0xff] (%p4538_p6) }
 0x5e4   : > { %3966 = vst [vmem:[%s3894_s10 + $0x60] sm:$0xff] (%p4538_p6), %v3965_v22 }
 0x5f6   : > { %v3793_v4 = vpop.permute.xlu2 %3792 }
 0x5f7   : > { %v3845_v21 = vmul.f32 %v3793_v4, %v3717_v53 }
 0x5f9   : > { %v3861_v37 = vadd.f32 %v3845_v21, %v3701_v1 }
 0x5fb   : > { %3877 = vst.msk [vmem:[%s5998_s7 + $0x48] sm:$0xff] %vm1309_vm1, %v3861_v37 }
 0x5fe   : > { %v3807_v6 = vpop.permute.xlu2 %3806 }
 0x5ff   : > { %v3847_v26 = vmul.f32 %v3807_v6, %v3719_v59 }
 0x601   : > { %v3863_v62 = vadd.f32 %v3847_v26, %v3703_v36 }
 0x602   : > { %v3971_v39 = vld [vmem:[%s5998_s7 + $0x48] sm:$0xff] (%p4538_p6) }
 0x603   : > { %3879 = vst.msk [vmem:[%s5998_s7 + $0x58] sm:$0xff] %vm1309_vm1, %v3863_v62 }
 0x604   : > { %3972 = vst [vmem:[%s3894_s10 + $0x90] sm:$0xff] (%p4538_p6), %v3971_v39 }
 0x606   : > { %v3821_v27 = vpop.permute.xlu2 %3820 }
 0x607   : > { %v3849_v57 = vmul.f32 %v3821_v27, %v3721_v55 }
 0x609   : > { %v3865_v5 = vadd.f32 %v3849_v57, %v3705_v18 }
 0x60a   : > { %v3975_v16 = vld [vmem:[%s5998_s7 + $0x58] sm:$0xff] (%p4538_p6) }
 0x60b   : > { %3881 = vst.msk [vmem:[%s5998_s7 + $0x68] sm:$0xff] %vm1309_vm1, %v3865_v5 }
 0x60c   : > { %3976 = vst [vmem:[%s3894_s10 + $0xb0] sm:$0xff] (%p4538_p6), %v3975_v16 }
 0x60e   : > { %v3835_v7 = vpop.permute.xlu2 %3834  ;;  %v3786_v0 = vpop.permute.xlu1 %3785 }
 0x60f   : > { %v3851_v30 = vmul.f32 %v3835_v7, %v3723_v15  ;;  %v3844_v33 = vmul.f32 %v3786_v0, %v3716_v2 }
 0x611   : > { %v3867_v63 = vadd.f32 %v3851_v30, %v3707_v35  ;;  %v3860_v31 = vadd.f32 %v3844_v33, %v3700_v10 }
 0x612   : > { %v3979_v49 = vld [vmem:[%s5998_s7 + $0x68] sm:$0xff] (%p4538_p6) }
 0x613   : > { %3883 = vst.msk [vmem:[%s5998_s7 + $0x78] sm:$0xff] %vm1309_vm1, %v3867_v63 }
 0x614   : > { %3876 = vst.msk [vmem:[%s5998_s7 + $0x40] sm:$0xff] %vm1309_vm1, %v3860_v31 }
 0x615   : > { %3980 = vst [vmem:[%s3894_s10 + $0xd0] sm:$0xff] (%p4538_p6), %v3979_v49 }
 0x616   : > { %v3800_v12 = vpop.permute.xlu1 %3799 }
 0x617   : > { %v3846_v60 = vmul.f32 %v3800_v12, %v3718_v3 }
 0x619   : > { %v3862_v28 = vadd.f32 %v3846_v60, %v3702_v43 }
 0x61a   : > { %v3983_v50 = vld [vmem:[%s5998_s7 + $0x78] sm:$0xff] (%p4538_p6) }
 0x61b   : > { %3878 = vst.msk [vmem:[%s5998_s7 + $0x50] sm:$0xff] %vm1309_vm1, %v3862_v28  ;;  %v3969_v38 = vld [vmem:[%s5998_s7 + $0x40] sm:$0xff] (%p4538_p6) }
 0x61c   : > { %3970 = vst [vmem:[%s3894_s10 + $0x80] sm:$0xff] (%p4538_p6), %v3969_v38 }
 0x61d   : > { %3984 = vst [vmem:[%s3894_s10 + $0xf0] sm:$0xff] (%p4538_p6), %v3983_v50 }
 0x61e   : > { %v3814_v51 = vpop.permute.xlu1 %3813 }
 0x61f   : > { %v3848_v47 = vmul.f32 %v3814_v51, %v3720_v34 }
 0x621   : > { %v3864_v52 = vadd.f32 %v3848_v47, %v3704_v44 }
 0x622   : > { %v3973_v32 = vld [vmem:[%s5998_s7 + $0x50] sm:$0xff] (%p4538_p6) }
 0x623   : > { %3880 = vst.msk [vmem:[%s5998_s7 + $0x60] sm:$0xff] %vm1309_vm1, %v3864_v52 }
 0x624   : > { %3974 = vst [vmem:[%s3894_s10 + $0xa0] sm:$0xff] (%p4538_p6), %v3973_v32 }
 0x626   : > { %v3828_v48 = vpop.permute.xlu1 %3827 }
 0x627   : > { %v3850_v40 = vmul.f32 %v3828_v48, %v3722_v20  ;;  %3890 = sbr.rel (!%p4538_p6) target bundleno = 1588 (0x634), region = 124 }
 0x629   : > { %v3866_v56 = vadd.f32 %v3850_v40, %v3706_v25 }
 0x62a   : > { %v3977_v61 = vld [vmem:[%s5998_s7 + $0x60] sm:$0xff] (%p4538_p6) }
 0x62b   : > { %3882 = vst.msk [vmem:[%s5998_s7 + $0x70] sm:$0xff] %vm1309_vm1, %v3866_v56 }
 0x62c   : > { %3978 = vst [vmem:[%s3894_s10 + $0xc0] sm:$0xff] %v3977_v61 }
 0x632   : > { %v3981_v41 = vld [vmem:[%s5998_s7 + $0x70] sm:$0xff] }
 0x633   : > { %3982 = vst [vmem:[%s3894_s10 + $0xe0] sm:$0xff] %v3981_v41 }
 0x634 PF: > { %s17_s29 = sadd.s32 1, %s4444_s29   ;;  %s6180_s23 = smov %s4424_s24 }
 0x635   : > { %p14_p13 = scmp.ge.s32.totalorder %s17_s29, 6   ;;  %s6181_s24 = smov %s4546_s14 }
 0x636   : > { %s6182_s25 = smov %s4436_s27  ;;  %s6183_s26 = smov %s4440_s28 }
 0x637   : > { %s6184_s27 = smov %s6187_s5  ;;  %s6185_s28 = smov %s6191_s30 }
 0x638   :  { %16 = sbr.rel (!%p14_p13) target bundleno = 6 (0x6), region = 209 }

</bundles_post_ra>
